<compile_context>
chip_gen: v6e
topology: v6e:2x2x1
jax: 0.10.0
libtpu: 0.0.40
codegen_flags: <defaults>
</compile_context>

<pallas_src>
import math
import functools

import jax
import jax.numpy as jnp
from jax.experimental import pallas as pl
from jax.experimental.pallas import tpu as pltpu

EPS = 1e-5  # torch.nn.LayerNorm default


def _ln_noaffine(v):
    """LayerNorm without affine (gamma/beta are folded into the next linear)."""
    mu = jnp.mean(v, axis=-1, keepdims=True)
    var = jnp.mean((v - mu) ** 2, axis=-1, keepdims=True)
    return (v - mu) * jax.lax.rsqrt(var + EPS)


# ------------------------------ fused kernel -------------------------------


def fused_transformer_kernel(x_ref, wqkv_ref, bqkv_ref, wo_ref, w1_ref, b1_ref,
                             w2_ref, bvec_ref, fcw_ref, fcb_ref,
                             o_ref, x_res,
                             *, BT, S, heads, d_k, D):
    l = pl.program_id(1)                                   # layer index (inner axis)
    M = BT * S

    # layer 0: residual stream = 4*emb + pe (both folded/added on the host)
    @pl.when(l == 0)
    def _():
        x_res[...] = x_ref[...]

    x = x_res[...]                                         # (M, D) f32, VMEM-resident

    # ----------------- attention (norm1 affine folded into wqkv) -----------------
    h = _ln_noaffine(x)
    hb = h.astype(jnp.bfloat16)
    # single fused QKV projection (1/sqrt(d_k) folded into the q columns)
    qkv = jnp.dot(hb, wqkv_ref[0], preferred_element_type=jnp.float32) + bqkv_ref[0]
    q = qkv[:, 0 * D:1 * D]
    k = qkv[:, 1 * D:2 * D]
    v = qkv[:, 2 * D:3 * D]

    def heads_to_batch(t):                                 # (M, D) -> (heads*BT, S, d_k)
        parts = [t[:, hh * d_k:(hh + 1) * d_k].reshape(BT, S, d_k)
                 for hh in range(heads)]
        return parts[0] if heads == 1 else jnp.concatenate(parts, axis=0)

    qh = heads_to_batch(q)
    kh = heads_to_batch(k)
    vh = heads_to_batch(v)

    # one batched score/softmax/context over all (head, sequence) pairs
    sc = jnp.einsum('bqd,bkd->bqk', qh, kh, preferred_element_type=jnp.float32)
    sc = sc - jnp.max(sc, axis=-1, keepdims=True)
    p = jnp.exp(sc)
    p = p * pl.reciprocal(jnp.sum(p, axis=-1, keepdims=True), approx=True)
    ctx = jnp.einsum('bqk,bkd->bqd', p, vh, preferred_element_type=jnp.float32)

    # torch-style head concat (columns h-major) -> single out-projection matmul
    ctx = ctx.reshape(heads, M, d_k)
    if heads == 1:
        cat = ctx[0]
    else:
        cat = jnp.concatenate([ctx[hh] for hh in range(heads)], axis=-1)   # (M, D)

    bvec = bvec_ref[0]                                     # (2, D): [2*bo, 2*b2]
    sa = jnp.dot(cat.astype(jnp.bfloat16), wo_ref[0],
                 preferred_element_type=jnp.float32)
    h2 = sa + bvec[0:1, :]                 # == 2 * MultiHeadAttention(norm1(x))

    # --------------- feed-forward (norm2 affine folded into w1/b1) ---------------
    y = _ln_noaffine(h2)
    ff = jnp.dot(y.astype(jnp.bfloat16), w1_ref[0],
                 preferred_element_type=jnp.float32) + b1_ref[0]
    ff = jnp.maximum(ff, 0.0)
    ff = jnp.dot(ff.astype(jnp.bfloat16), w2_ref[0],
                 preferred_element_type=jnp.float32) + bvec[1:2, :]   # == 2 * FF(y)

    x_res[...] = ff                        # residual stream stays resident in VMEM

    # ------ last layer: final LayerNorm (affine folded into fc) + fc(token 0) ------
    @pl.when(l == pl.num_programs(1) - 1)
    def _():
        x0 = x_res[pl.ds(0, BT, stride=S), :]              # token 0 of each sequence
        hn = _ln_noaffine(x0)
        o_ref[...] = jnp.dot(hn.astype(jnp.bfloat16), fcw_ref[...],
                             preferred_element_type=jnp.float32) + fcb_ref[...]


# ----------------------------- parameters ----------------------------------


def make_pe(max_seq_len, d_model):
    # exact reproduction of PositionalEncoder.__init__ formula
    pos = jnp.arange(max_seq_len, dtype=jnp.float32)[:, None]       # (L, 1)
    i = jnp.arange(0, d_model, 2, dtype=jnp.float32)[None, :]       # (1, D/2)
    sin_part = jnp.sin(pos / (10000.0 ** (2.0 * i / d_model)))
    cos_part = jnp.cos(pos / (10000.0 ** (2.0 * (i + 1.0) / d_model)))
    pe = jnp.stack([sin_part, cos_part], axis=-1).reshape(max_seq_len, d_model)
    return pe.astype(jnp.float32)


def init_params(key, vocab_size, d_model, N, d_ff=2048, max_seq_len=64):
    std = 0.02
    keys = jax.random.split(key, 2 + 6 * N)
    kit = iter(keys)

    def w(shape):
        return jax.random.normal(next(kit), shape, jnp.float32) * std

    params = {
        'embedding': w((vocab_size, d_model)),
        'pe': make_pe(max_seq_len, d_model),
        'layers': [],
        'normg': jnp.ones((1, d_model), jnp.float32),
        'normb': jnp.zeros((1, d_model), jnp.float32),
    }
    for _ in range(N):
        lp = {
            'ln1g': jnp.ones((1, d_model), jnp.float32),
            'ln1b': jnp.zeros((1, d_model), jnp.float32),
            'wq': w((d_model, d_model)), 'bq': jnp.zeros((1, d_model), jnp.float32),
            'wk': w((d_model, d_model)), 'bk': jnp.zeros((1, d_model), jnp.float32),
            'wv': w((d_model, d_model)), 'bv': jnp.zeros((1, d_model), jnp.float32),
            'wo': w((d_model, d_model)), 'bo': jnp.zeros((1, d_model), jnp.float32),
            'ln2g': jnp.ones((1, d_model), jnp.float32),
            'ln2b': jnp.zeros((1, d_model), jnp.float32),
            'w1': w((d_model, d_ff)), 'b1': jnp.zeros((1, d_ff), jnp.float32),
            'w2': w((d_ff, d_model)), 'b2': jnp.zeros((1, d_model), jnp.float32),
        }
        params['layers'].append(lp)
    params['fcw'] = w((d_model, 2))
    params['fcb'] = jnp.zeros((1, 2), jnp.float32)
    return params


def pack_params(params, heads):
    """Host-side prep: fuse QKV, fold LayerNorm affines / constant scalars into the
    following linear layers, stack per-layer weights on a leading N axis, cast matmul
    weights to bf16, pack small per-layer biases into slabs."""
    D = params['embedding'].shape[1]
    d_k = D // heads
    scale = 1.0 / math.sqrt(d_k)
    bf = jnp.bfloat16

    wqkv_l, bqkv_l, wo_l, w1_l, b1_l, w2_l, bvec_l = [], [], [], [], [], [], []
    for lp in params['layers']:
        # fused QKV projection; 1/sqrt(d_k) folded into the q third
        wq = lp['wq'] * scale
        bq = lp['bq'] * scale
        wcat = jnp.concatenate([wq, lp['wk'], lp['wv']], axis=1)        # (D, 3D)
        bcat = jnp.concatenate([bq, lp['bk'], lp['bv']], axis=1)        # (1, 3D)
        # fold LayerNorm-1 affine into the QKV projection
        g1 = lp['ln1g'].reshape(D, 1)
        wqkv = g1 * wcat
        bqkv = lp['ln1b'] @ wcat + bcat
        # 2.0 = eval-mode "dropout(x)+x" after x was overwritten by sa(x,x,x)
        wo = lp['wo'] * 2.0
        bo = lp['bo'] * 2.0
        # fold LayerNorm-2 affine into linear_1
        g2 = lp['ln2g'].reshape(D, 1)
        w1 = g2 * lp['w1']
        b1 = lp['ln2b'] @ lp['w1'] + lp['b1']
        # 2.0 = eval-mode "dropout(y)+y" after y was overwritten by FF(y)
        w2 = lp['w2'] * 2.0
        b2 = lp['b2'] * 2.0

        wqkv_l.append(wqkv)
        bqkv_l.append(bqkv)
        wo_l.append(wo)
        w1_l.append(w1)
        b1_l.append(b1)
        w2_l.append(w2)
        bvec_l.append(jnp.concatenate([bo, b2], axis=0))                # (2, D)

    # fold final LayerNorm affine into the fc head
    g = params['normg'].reshape(D, 1)
    fcw = g * params['fcw']
    fcb = params['normb'] @ params['fcw'] + params['fcb']

    return {
        'emb4': params['embedding'] * 4.0,   # PositionalEncoder's x*4 folded in
        'pe': params['pe'],
        'wqkv': jnp.stack(wqkv_l).astype(bf),    # (N, D, 3D)
        'bqkv': jnp.stack(bqkv_l),               # (N, 1, 3D) f32
        'wo': jnp.stack(wo_l).astype(bf),        # (N, D, D)
        'w1': jnp.stack(w1_l).astype(bf),        # (N, D, d_ff)
        'b1': jnp.stack(b1_l),                   # (N, 1, d_ff) f32
        'w2': jnp.stack(w2_l).astype(bf),        # (N, d_ff, D)
        'bvec': jnp.stack(bvec_l),               # (N, 2, D) f32: [2*bo, 2*b2]
        'fcw': fcw.astype(bf),                   # (D, 2)
        'fcb': fcb,                              # (1, 2) f32
    }


# ------------------------------- forward -----------------------------------


@functools.partial(jax.jit, static_argnames=("heads", "batch_tile"))
def trans_model_forward(packed, x_idx, lengths, heads, batch_tile=None):
    del lengths                                  # unused in the reference forward
    B, S = x_idx.shape
    D = packed['emb4'].shape[1]
    d_k = D // heads
    N = packed['wqkv'].shape[0]
    BT = B if batch_tile is None else batch_tile     # batch sequences per grid tile
    assert B % BT == 0

    # embedding gather + positional-encoding add are plain-JAX glue outside the kernel
    x_in = (packed['emb4'][x_idx] + packed['pe'][:S][None, :, :]).reshape(B * S, D)

    inputs = [x_in, packed['wqkv'], packed['bqkv'], packed['wo'],
              packed['w1'], packed['b1'], packed['w2'], packed['bvec'],
              packed['fcw'], packed['fcb']]

    def layer_spec(a):                           # stacked per-layer weight (N, ...)
        nrest = a.ndim - 1
        return pl.BlockSpec((1,) + a.shape[1:],
                            lambda b, l, _n=nrest: (l,) + (0,) * _n)

    in_specs = [
        pl.BlockSpec((BT * S, D), lambda b, l: (b, 0)),          # residual input
        layer_spec(packed['wqkv']),
        layer_spec(packed['bqkv']),
        layer_spec(packed['wo']),
        layer_spec(packed['w1']),
        layer_spec(packed['b1']),
        layer_spec(packed['w2']),
        layer_spec(packed['bvec']),
        pl.BlockSpec(packed['fcw'].shape, lambda b, l: (0, 0)),  # constant
        pl.BlockSpec(packed['fcb'].shape, lambda b, l: (0, 0)),  # constant
    ]

    kern = functools.partial(fused_transformer_kernel,
                             BT=BT, S=S, heads=heads, d_k=d_k, D=D)
    # NOTE: for scaled-up configs (large B*S or d_ff), budget VMEM explicitly via
    # pltpu.CompilerParams(vmem_limit_bytes=...) and/or shrink BT (v7x: 64 MiB VMEM).
    return pl.pallas_call(
        kern,
        out_shape=jax.ShapeDtypeStruct((B, 2), jnp.float32),
        grid=(B // BT, N),
        in_specs=in_specs,
        out_specs=pl.BlockSpec((BT, 2), lambda b, l: (b, 0)),
        scratch_shapes=[pltpu.VMEM((BT * S, D), jnp.float32)],
        compiler_params=pltpu.CompilerParams(
            dimension_semantics=("parallel", "arbitrary")),
    )(*inputs)


if __name__ == "__main__":
    vocab_size, d_model, N, heads, dropout = 50, 32, 2, 4, 0.1
    B, S = 2, 8

    key = jax.random.PRNGKey(0)
    kp, kx = jax.random.split(key)
    params = init_params(kp, vocab_size, d_model, N)
    packed = pack_params(params, heads)
    x = jax.random.randint(kx, (B, S), 0, vocab_size, dtype=jnp.int32)
    lengths = jnp.full((B,), S, dtype=jnp.int32)

    out = trans_model_forward(packed, x, lengths, heads=heads)
    out = jax.block_until_ready(out)
    assert out.shape == (B, 2) and out.dtype == jnp.float32
    assert bool(jnp.all(jnp.isfinite(out)))
    print("KERNEL_OK")
</pallas_src>

<mosaic_0001>
module attributes {stable_mosaic.version = 11 : i64} {
  func.func @fused_transformer_kernel(%arg0: i32, %arg1: i32, %arg2: memref<16x32xf32, #tpu.memory_space<vmem>>, %arg3: memref<1x32x96xbf16, #tpu.memory_space<vmem>>, %arg4: memref<1x1x96xf32, #tpu.memory_space<vmem>>, %arg5: memref<1x32x32xbf16, #tpu.memory_space<vmem>>, %arg6: memref<1x32x2048xbf16, #tpu.memory_space<vmem>>, %arg7: memref<1x1x2048xf32, #tpu.memory_space<vmem>>, %arg8: memref<1x2048x32xbf16, #tpu.memory_space<vmem>>, %arg9: memref<1x2x32xf32, #tpu.memory_space<vmem>>, %arg10: memref<32x2xbf16, #tpu.memory_space<vmem>>, %arg11: memref<1x2xf32, #tpu.memory_space<vmem>>, %arg12: memref<2x2xf32, #tpu.memory_space<vmem>>, %arg13: memref<16x32xf32, #tpu.memory_space<vmem>>) attributes {dimension_semantics = [#tpu.dimension_semantics<parallel>, #tpu.dimension_semantics<arbitrary>], iteration_bounds = array<i64: 1, 2>, scalar_prefetch = 0 : i64, scratch_operands = 1 : i64, tpu.core_type = #tpu.core_type<tc>, window_params = [{transform_indices = @transform_0, window_bounds = array<i64: 16, 32>}, {transform_indices = @transform_1, window_bounds = array<i64: 1, 32, 96>}, {transform_indices = @transform_2, window_bounds = array<i64: 1, 1, 96>}, {transform_indices = @transform_3, window_bounds = array<i64: 1, 32, 32>}, {transform_indices = @transform_4, window_bounds = array<i64: 1, 32, 2048>}, {transform_indices = @transform_5, window_bounds = array<i64: 1, 1, 2048>}, {transform_indices = @transform_6, window_bounds = array<i64: 1, 2048, 32>}, {transform_indices = @transform_7, window_bounds = array<i64: 1, 2, 32>}, {pipeline_mode = #tpu.pipeline_mode<synchronous>, transform_indices = @transform_8, window_bounds = array<i64: 32, 2>}, {pipeline_mode = #tpu.pipeline_mode<synchronous>, transform_indices = @transform_9, window_bounds = array<i64: 1, 2>}, {transform_indices = @transform_10, window_bounds = array<i64: 2, 2>}]} {
    %c0_i32 = arith.constant 0 : i32
    %0 = arith.cmpi eq, %arg1, %c0_i32 : i32
    %1 = arith.extui %0 : i1 to i32
    %c0_i32_0 = arith.constant 0 : i32
    %2 = arith.cmpi ne, %1, %c0_i32_0 : i32
    scf.if %2 {
      %c0_44 = arith.constant 0 : index
      %c0_45 = arith.constant 0 : index
      %130 = vector.load %arg2[%c0_44, %c0_45] : memref<16x32xf32, #tpu.memory_space<vmem>>, vector<16x32xf32>
      %c0_46 = arith.constant 0 : index
      %c0_47 = arith.constant 0 : index
      %131 = vector.load %arg13[%c0_46, %c0_47] : memref<16x32xf32, #tpu.memory_space<vmem>>, vector<16x32xf32>
      tpu.vector_store %arg13[%c0_46, %c0_47], %130 {strides = array<i32>} : memref<16x32xf32, #tpu.memory_space<vmem>>, vector<16x32xf32>,
    } else {
    }
    %c0 = arith.constant 0 : index
    %c0_1 = arith.constant 0 : index
    %3 = vector.load %arg13[%c0, %c0_1] : memref<16x32xf32, #tpu.memory_space<vmem>>, vector<16x32xf32>
    %cst = arith.constant dense<0.000000e+00> : vector<16xf32>
    %4 = vector.multi_reduction <add>, %3, %cst [1] : vector<16x32xf32> to vector<16xf32>
    %5 = vector.shape_cast %4 : vector<16xf32> to vector<16x1xf32>
    %cst_2 = arith.constant 3.200000e+01 : f32
    %6 = vector.broadcast %cst_2 : f32 to vector<16x1xf32>
    %7 = arith.divf %5, %6 : vector<16x1xf32>
    %8 = vector.broadcast %7 : vector<16x1xf32> to vector<16x32xf32>
    %9 = arith.subf %3, %8 : vector<16x32xf32>
    %10 = arith.mulf %9, %9 : vector<16x32xf32>
    %cst_3 = arith.constant dense<0.000000e+00> : vector<16xf32>
    %11 = vector.multi_reduction <add>, %10, %cst_3 [1] : vector<16x32xf32> to vector<16xf32>
    %12 = vector.shape_cast %11 : vector<16xf32> to vector<16x1xf32>
    %cst_4 = arith.constant 3.200000e+01 : f32
    %13 = vector.broadcast %cst_4 : f32 to vector<16x1xf32>
    %14 = arith.divf %12, %13 : vector<16x1xf32>
    %15 = vector.broadcast %7 : vector<16x1xf32> to vector<16x32xf32>
    %16 = arith.subf %3, %15 : vector<16x32xf32>
    %cst_5 = arith.constant 9.99999974E-6 : f32
    %17 = vector.broadcast %cst_5 : f32 to vector<16x1xf32>
    %18 = arith.addf %14, %17 : vector<16x1xf32>
    %19 = math.rsqrt %18 : vector<16x1xf32>
    %20 = vector.broadcast %19 : vector<16x1xf32> to vector<16x32xf32>
    %21 = arith.mulf %16, %20 : vector<16x32xf32>
    %22 = arith.truncf %21 : vector<16x32xf32> to vector<16x32xbf16>
    %c0_6 = arith.constant 0 : index
    %c0_7 = arith.constant 0 : index
    %c0_8 = arith.constant 0 : index
    %23 = vector.load %arg3[%c0_6, %c0_7, %c0_8] : memref<1x32x96xbf16, #tpu.memory_space<vmem>>, vector<1x32x96xbf16>
    %24 = vector.shape_cast %23 : vector<1x32x96xbf16> to vector<32x96xbf16>
    %cst_9 = arith.constant dense<0.000000e+00> : vector<16x96xf32>
    %25 = tpu.matmul %22, %24, %cst_9 {dimension_numbers = #tpu.dot_dimension_numbers<[1], [0], [0], [1], [0, 0, 1, 1], [], []>} : vector<16x32xbf16>, vector<32x96xbf16>, vector<16x96xf32> -> vector<16x96xf32>
    %c0_10 = arith.constant 0 : index
    %c0_11 = arith.constant 0 : index
    %c0_12 = arith.constant 0 : index
    %26 = vector.load %arg4[%c0_10, %c0_11, %c0_12] : memref<1x1x96xf32, #tpu.memory_space<vmem>>, vector<1x1x96xf32>
    %27 = vector.shape_cast %26 : vector<1x1x96xf32> to vector<1x96xf32>
    %28 = vector.broadcast %27 : vector<1x96xf32> to vector<16x96xf32>
    %29 = arith.addf %25, %28 : vector<16x96xf32>
    %30 = vector.extract_strided_slice %29 {offsets = [0, 0], sizes = [16, 32], strides = [1, 1]} : vector<16x96xf32> to vector<16x32xf32>
    %31 = vector.extract_strided_slice %29 {offsets = [0, 32], sizes = [16, 32], strides = [1, 1]} : vector<16x96xf32> to vector<16x32xf32>
    %32 = vector.extract_strided_slice %29 {offsets = [0, 64], sizes = [16, 32], strides = [1, 1]} : vector<16x96xf32> to vector<16x32xf32>
    %33 = vector.extract_strided_slice %30 {offsets = [0, 0], sizes = [16, 8], strides = [1, 1]} : vector<16x32xf32> to vector<16x8xf32>
    %34 = vector.shape_cast %33 : vector<16x8xf32> to vector<2x8x8xf32>
    %35 = vector.extract_strided_slice %30 {offsets = [0, 8], sizes = [16, 8], strides = [1, 1]} : vector<16x32xf32> to vector<16x8xf32>
    %36 = vector.shape_cast %35 : vector<16x8xf32> to vector<2x8x8xf32>
    %37 = vector.extract_strided_slice %30 {offsets = [0, 16], sizes = [16, 8], strides = [1, 1]} : vector<16x32xf32> to vector<16x8xf32>
    %38 = vector.shape_cast %37 : vector<16x8xf32> to vector<2x8x8xf32>
    %39 = vector.extract_strided_slice %30 {offsets = [0, 24], sizes = [16, 8], strides = [1, 1]} : vector<16x32xf32> to vector<16x8xf32>
    %40 = vector.shape_cast %39 : vector<16x8xf32> to vector<2x8x8xf32>
    %41 = tpu.concatenate %34, %36, %38, %40 in 0 : vector<2x8x8xf32>, vector<2x8x8xf32>, vector<2x8x8xf32>, vector<2x8x8xf32> -> vector<8x8x8xf32>
    %42 = vector.extract_strided_slice %31 {offsets = [0, 0], sizes = [16, 8], strides = [1, 1]} : vector<16x32xf32> to vector<16x8xf32>
    %43 = vector.shape_cast %42 : vector<16x8xf32> to vector<2x8x8xf32>
    %44 = vector.extract_strided_slice %31 {offsets = [0, 8], sizes = [16, 8], strides = [1, 1]} : vector<16x32xf32> to vector<16x8xf32>
    %45 = vector.shape_cast %44 : vector<16x8xf32> to vector<2x8x8xf32>
    %46 = vector.extract_strided_slice %31 {offsets = [0, 16], sizes = [16, 8], strides = [1, 1]} : vector<16x32xf32> to vector<16x8xf32>
    %47 = vector.shape_cast %46 : vector<16x8xf32> to vector<2x8x8xf32>
    %48 = vector.extract_strided_slice %31 {offsets = [0, 24], sizes = [16, 8], strides = [1, 1]} : vector<16x32xf32> to vector<16x8xf32>
    %49 = vector.shape_cast %48 : vector<16x8xf32> to vector<2x8x8xf32>
    %50 = tpu.concatenate %43, %45, %47, %49 in 0 : vector<2x8x8xf32>, vector<2x8x8xf32>, vector<2x8x8xf32>, vector<2x8x8xf32> -> vector<8x8x8xf32>
    %51 = vector.extract_strided_slice %32 {offsets = [0, 0], sizes = [16, 8], strides = [1, 1]} : vector<16x32xf32> to vector<16x8xf32>
    %52 = vector.shape_cast %51 : vector<16x8xf32> to vector<2x8x8xf32>
    %53 = vector.extract_strided_slice %32 {offsets = [0, 8], sizes = [16, 8], strides = [1, 1]} : vector<16x32xf32> to vector<16x8xf32>
    %54 = vector.shape_cast %53 : vector<16x8xf32> to vector<2x8x8xf32>
    %55 = vector.extract_strided_slice %32 {offsets = [0, 16], sizes = [16, 8], strides = [1, 1]} : vector<16x32xf32> to vector<16x8xf32>
    %56 = vector.shape_cast %55 : vector<16x8xf32> to vector<2x8x8xf32>
    %57 = vector.extract_strided_slice %32 {offsets = [0, 24], sizes = [16, 8], strides = [1, 1]} : vector<16x32xf32> to vector<16x8xf32>
    %58 = vector.shape_cast %57 : vector<16x8xf32> to vector<2x8x8xf32>
    %59 = tpu.concatenate %52, %54, %56, %58 in 0 : vector<2x8x8xf32>, vector<2x8x8xf32>, vector<2x8x8xf32>, vector<2x8x8xf32> -> vector<8x8x8xf32>
    "tpu.trace_start"() <{level = 10 : i32, message = "bqd,bkd->bqk"}> : () -> ()
    %cst_13 = arith.constant dense<0.000000e+00> : vector<8x8x8xf32>
    %60 = tpu.matmul %41, %50, %cst_13 {dimension_numbers = #tpu.dot_dimension_numbers<[2], [2], [1], [1], [0, 0, 0, 1, 1, 1], [0], [0]>} : vector<8x8x8xf32>, vector<8x8x8xf32>, vector<8x8x8xf32> -> vector<8x8x8xf32>
    "tpu.trace_stop"() : () -> ()
    %cst_14 = arith.constant dense<0xFF800000> : vector<8x8xf32>
    %61 = vector.multi_reduction <maximumf>, %60, %cst_14 [2] : vector<8x8x8xf32> to vector<8x8xf32>
    %62 = vector.shape_cast %61 : vector<8x8xf32> to vector<8x8x1xf32>
    %63 = vector.broadcast %62 : vector<8x8x1xf32> to vector<8x8x8xf32>
    %64 = arith.subf %60, %63 : vector<8x8x8xf32>
    %65 = math.exp %64 : vector<8x8x8xf32>
    %cst_15 = arith.constant dense<0.000000e+00> : vector<8x8xf32>
    %66 = vector.multi_reduction <add>, %65, %cst_15 [2] : vector<8x8x8xf32> to vector<8x8xf32>
    %67 = vector.shape_cast %66 : vector<8x8xf32> to vector<8x8x1xf32>
    %68 = tpu.reciprocal %67 {approx = true} : vector<8x8x1xf32> -> vector<8x8x1xf32>
    %69 = vector.broadcast %68 : vector<8x8x1xf32> to vector<8x8x8xf32>
    %70 = arith.mulf %65, %69 : vector<8x8x8xf32>
    "tpu.trace_start"() <{level = 10 : i32, message = "bqk,bkd->bqd"}> : () -> ()
    %cst_16 = arith.constant dense<0.000000e+00> : vector<8x8x8xf32>
    %71 = tpu.matmul %70, %59, %cst_16 {dimension_numbers = #tpu.dot_dimension_numbers<[2], [1], [1], [2], [0, 0, 0, 1, 1, 2], [0], [0]>} : vector<8x8x8xf32>, vector<8x8x8xf32>, vector<8x8x8xf32> -> vector<8x8x8xf32>
    "tpu.trace_stop"() : () -> ()
    %72 = vector.shape_cast %71 : vector<8x8x8xf32> to vector<4x16x8xf32>
    %73 = vector.extract_strided_slice %72 {offsets = [0, 0, 0], sizes = [1, 16, 8], strides = [1, 1, 1]} : vector<4x16x8xf32> to vector<1x16x8xf32>
    %74 = vector.shape_cast %73 : vector<1x16x8xf32> to vector<16x8xf32>
    %75 = vector.extract_strided_slice %72 {offsets = [1, 0, 0], sizes = [1, 16, 8], strides = [1, 1, 1]} : vector<4x16x8xf32> to vector<1x16x8xf32>
    %76 = vector.shape_cast %75 : vector<1x16x8xf32> to vector<16x8xf32>
    %77 = vector.extract_strided_slice %72 {offsets = [2, 0, 0], sizes = [1, 16, 8], strides = [1, 1, 1]} : vector<4x16x8xf32> to vector<1x16x8xf32>
    %78 = vector.shape_cast %77 : vector<1x16x8xf32> to vector<16x8xf32>
    %79 = vector.extract_strided_slice %72 {offsets = [3, 0, 0], sizes = [1, 16, 8], strides = [1, 1, 1]} : vector<4x16x8xf32> to vector<1x16x8xf32>
    %80 = vector.shape_cast %79 : vector<1x16x8xf32> to vector<16x8xf32>
    %81 = tpu.concatenate %74, %76, %78, %80 in 1 : vector<16x8xf32>, vector<16x8xf32>, vector<16x8xf32>, vector<16x8xf32> -> vector<16x32xf32>
    %c0_17 = arith.constant 0 : index
    %c0_18 = arith.constant 0 : index
    %c0_19 = arith.constant 0 : index
    %82 = vector.load %arg9[%c0_17, %c0_18, %c0_19] : memref<1x2x32xf32, #tpu.memory_space<vmem>>, vector<1x2x32xf32>
    %83 = vector.shape_cast %82 : vector<1x2x32xf32> to vector<2x32xf32>
    %84 = arith.truncf %81 : vector<16x32xf32> to vector<16x32xbf16>
    %c0_20 = arith.constant 0 : index
    %c0_21 = arith.constant 0 : index
    %c0_22 = arith.constant 0 : index
    %85 = vector.load %arg5[%c0_20, %c0_21, %c0_22] : memref<1x32x32xbf16, #tpu.memory_space<vmem>>, vector<1x32x32xbf16>
    %86 = vector.shape_cast %85 : vector<1x32x32xbf16> to vector<32x32xbf16>
    %cst_23 = arith.constant dense<0.000000e+00> : vector<16x32xf32>
    %87 = tpu.matmul %84, %86, %cst_23 {dimension_numbers = #tpu.dot_dimension_numbers<[1], [0], [0], [1], [0, 0, 1, 1], [], []>} : vector<16x32xbf16>, vector<32x32xbf16>, vector<16x32xf32> -> vector<16x32xf32>
    %88 = vector.extract_strided_slice %83 {offsets = [0, 0], sizes = [1, 32], strides = [1, 1]} : vector<2x32xf32> to vector<1x32xf32>
    %89 = vector.broadcast %88 : vector<1x32xf32> to vector<16x32xf32>
    %90 = arith.addf %87, %89 : vector<16x32xf32>
    %cst_24 = arith.constant dense<0.000000e+00> : vector<16xf32>
    %91 = vector.multi_reduction <add>, %90, %cst_24 [1] : vector<16x32xf32> to vector<16xf32>
    %92 = vector.shape_cast %91 : vector<16xf32> to vector<16x1xf32>
    %cst_25 = arith.constant 3.200000e+01 : f32
    %93 = vector.broadcast %cst_25 : f32 to vector<16x1xf32>
    %94 = arith.divf %92, %93 : vector<16x1xf32>
    %95 = vector.broadcast %94 : vector<16x1xf32> to vector<16x32xf32>
    %96 = arith.subf %90, %95 : vector<16x32xf32>
    %97 = arith.mulf %96, %96 : vector<16x32xf32>
    %cst_26 = arith.constant dense<0.000000e+00> : vector<16xf32>
    %98 = vector.multi_reduction <add>, %97, %cst_26 [1] : vector<16x32xf32> to vector<16xf32>
    %99 = vector.shape_cast %98 : vector<16xf32> to vector<16x1xf32>
    %cst_27 = arith.constant 3.200000e+01 : f32
    %100 = vector.broadcast %cst_27 : f32 to vector<16x1xf32>
    %101 = arith.divf %99, %100 : vector<16x1xf32>
    %102 = vector.broadcast %94 : vector<16x1xf32> to vector<16x32xf32>
    %103 = arith.subf %90, %102 : vector<16x32xf32>
    %cst_28 = arith.constant 9.99999974E-6 : f32
    %104 = vector.broadcast %cst_28 : f32 to vector<16x1xf32>
    %105 = arith.addf %101, %104 : vector<16x1xf32>
    %106 = math.rsqrt %105 : vector<16x1xf32>
    %107 = vector.broadcast %106 : vector<16x1xf32> to vector<16x32xf32>
    %108 = arith.mulf %103, %107 : vector<16x32xf32>
    %109 = arith.truncf %108 : vector<16x32xf32> to vector<16x32xbf16>
    %c0_29 = arith.constant 0 : index
    %c0_30 = arith.constant 0 : index
    %c0_31 = arith.constant 0 : index
    %110 = vector.load %arg6[%c0_29, %c0_30, %c0_31] : memref<1x32x2048xbf16, #tpu.memory_space<vmem>>, vector<1x32x2048xbf16>
    %111 = vector.shape_cast %110 : vector<1x32x2048xbf16> to vector<32x2048xbf16>
    %cst_32 = arith.constant dense<0.000000e+00> : vector<16x2048xf32>
    %112 = tpu.matmul %109, %111, %cst_32 {dimension_numbers = #tpu.dot_dimension_numbers<[1], [0], [0], [1], [0, 0, 1, 1], [], []>} : vector<16x32xbf16>, vector<32x2048xbf16>, vector<16x2048xf32> -> vector<16x2048xf32>
    %c0_33 = arith.constant 0 : index
    %c0_34 = arith.constant 0 : index
    %c0_35 = arith.constant 0 : index
    %113 = vector.load %arg7[%c0_33, %c0_34, %c0_35] : memref<1x1x2048xf32, #tpu.memory_space<vmem>>, vector<1x1x2048xf32>
    %114 = vector.shape_cast %113 : vector<1x1x2048xf32> to vector<1x2048xf32>
    %115 = vector.broadcast %114 : vector<1x2048xf32> to vector<16x2048xf32>
    %116 = arith.addf %112, %115 : vector<16x2048xf32>
    %cst_36 = arith.constant 0.000000e+00 : f32
    %117 = vector.broadcast %cst_36 : f32 to vector<16x2048xf32>
    %118 = arith.maximumf %116, %117 : vector<16x2048xf32>
    %119 = arith.truncf %118 : vector<16x2048xf32> to vector<16x2048xbf16>
    %c0_37 = arith.constant 0 : index
    %c0_38 = arith.constant 0 : index
    %c0_39 = arith.constant 0 : index
    %120 = vector.load %arg8[%c0_37, %c0_38, %c0_39] : memref<1x2048x32xbf16, #tpu.memory_space<vmem>>, vector<1x2048x32xbf16>
    %121 = vector.shape_cast %120 : vector<1x2048x32xbf16> to vector<2048x32xbf16>
    %cst_40 = arith.constant dense<0.000000e+00> : vector<16x32xf32>
    %122 = tpu.matmul %119, %121, %cst_40 {dimension_numbers = #tpu.dot_dimension_numbers<[1], [0], [0], [1], [0, 0, 1, 1], [], []>} : vector<16x2048xbf16>, vector<2048x32xbf16>, vector<16x32xf32> -> vector<16x32xf32>
    %123 = vector.extract_strided_slice %83 {offsets = [1, 0], sizes = [1, 32], strides = [1, 1]} : vector<2x32xf32> to vector<1x32xf32>
    %124 = vector.broadcast %123 : vector<1x32xf32> to vector<16x32xf32>
    %125 = arith.addf %122, %124 : vector<16x32xf32>
    %c0_41 = arith.constant 0 : index
    %c0_42 = arith.constant 0 : index
    %126 = vector.load %arg13[%c0_41, %c0_42] : memref<16x32xf32, #tpu.memory_space<vmem>>, vector<16x32xf32>
    tpu.vector_store %arg13[%c0_41, %c0_42], %125 {strides = array<i32>} : memref<16x32xf32, #tpu.memory_space<vmem>>, vector<16x32xf32>,
    %c1_i32 = arith.constant 1 : i32
    %127 = arith.cmpi eq, %arg1, %c1_i32 : i32
    %128 = arith.extui %127 : i1 to i32
    %c0_i32_43 = arith.constant 0 : i32
    %129 = arith.cmpi ne, %128, %c0_i32_43 : i32
    scf.if %129 {
      %c0_44 = arith.constant 0 : index
      %c0_45 = arith.constant 0 : index
      %130 = tpu.strided_load %arg13[%c0_44, %c0_45] {strides = array<i32: 8, 1>} : memref<16x32xf32, #tpu.memory_space<vmem>>, vector<2x32xf32>
      %cst_46 = arith.constant dense<0.000000e+00> : vector<2xf32>
      %131 = vector.multi_reduction <add>, %130, %cst_46 [1] : vector<2x32xf32> to vector<2xf32>
      %132 = vector.shape_cast %131 : vector<2xf32> to vector<2x1xf32>
      %cst_47 = arith.constant 3.200000e+01 : f32
      %133 = vector.broadcast %cst_47 : f32 to vector<2x1xf32>
      %134 = arith.divf %132, %133 : vector<2x1xf32>
      %135 = vector.broadcast %134 : vector<2x1xf32> to vector<2x32xf32>
      %136 = arith.subf %130, %135 : vector<2x32xf32>
      %137 = arith.mulf %136, %136 : vector<2x32xf32>
      %cst_48 = arith.constant dense<0.000000e+00> : vector<2xf32>
      %138 = vector.multi_reduction <add>, %137, %cst_48 [1] : vector<2x32xf32> to vector<2xf32>
      %139 = vector.shape_cast %138 : vector<2xf32> to vector<2x1xf32>
      %cst_49 = arith.constant 3.200000e+01 : f32
      %140 = vector.broadcast %cst_49 : f32 to vector<2x1xf32>
      %141 = arith.divf %139, %140 : vector<2x1xf32>
      %142 = vector.broadcast %134 : vector<2x1xf32> to vector<2x32xf32>
      %143 = arith.subf %130, %142 : vector<2x32xf32>
      %cst_50 = arith.constant 9.99999974E-6 : f32
      %144 = vector.broadcast %cst_50 : f32 to vector<2x1xf32>
      %145 = arith.addf %141, %144 : vector<2x1xf32>
      %146 = math.rsqrt %145 : vector<2x1xf32>
      %147 = vector.broadcast %146 : vector<2x1xf32> to vector<2x32xf32>
      %148 = arith.mulf %143, %147 : vector<2x32xf32>
      %149 = arith.truncf %148 : vector<2x32xf32> to vector<2x32xbf16>
      %c0_51 = arith.constant 0 : index
      %c0_52 = arith.constant 0 : index
      %150 = vector.load %arg10[%c0_51, %c0_52] : memref<32x2xbf16, #tpu.memory_space<vmem>>, vector<32x2xbf16>
      %cst_53 = arith.constant dense<0.000000e+00> : vector<2x2xf32>
      %151 = tpu.matmul %149, %150, %cst_53 {dimension_numbers = #tpu.dot_dimension_numbers<[1], [0], [0], [1], [0, 0, 1, 1], [], []>} : vector<2x32xbf16>, vector<32x2xbf16>, vector<2x2xf32> -> vector<2x2xf32>
      %c0_54 = arith.constant 0 : index
      %c0_55 = arith.constant 0 : index
      %152 = vector.load %arg11[%c0_54, %c0_55] : memref<1x2xf32, #tpu.memory_space<vmem>>, vector<1x2xf32>
      %153 = vector.broadcast %152 : vector<1x2xf32> to vector<2x2xf32>
      %154 = arith.addf %151, %153 : vector<2x2xf32>
      %c0_56 = arith.constant 0 : index
      %c0_57 = arith.constant 0 : index
      %155 = vector.load %arg12[%c0_56, %c0_57] : memref<2x2xf32, #tpu.memory_space<vmem>>, vector<2x2xf32>
      tpu.vector_store %arg12[%c0_56, %c0_57], %154 {strides = array<i32>} : memref<2x2xf32, #tpu.memory_space<vmem>>, vector<2x2xf32>,
    } else {
    }
    return
  }
  func.func @transform_0(%arg0: i32, %arg1: i32) -> (i32, i32) {
    %c0_i32 = arith.constant 0 : i32
    %c0_i32_0 = arith.constant 0 : i32
    return %arg0, %c0_i32 : i32, i32
  }
  func.func @transform_1(%arg0: i32, %arg1: i32) -> (i32, i32, i32) {
    %c0_i32 = arith.constant 0 : i32
    %c0_i32_0 = arith.constant 0 : i32
    %c0_i32_1 = arith.constant 0 : i32
    return %arg1, %c0_i32, %c0_i32_0 : i32, i32, i32
  }
  func.func @transform_2(%arg0: i32, %arg1: i32) -> (i32, i32, i32) {
    %c0_i32 = arith.constant 0 : i32
    %c0_i32_0 = arith.constant 0 : i32
    %c0_i32_1 = arith.constant 0 : i32
    return %arg1, %c0_i32, %c0_i32_0 : i32, i32, i32
  }
  func.func @transform_3(%arg0: i32, %arg1: i32) -> (i32, i32, i32) {
    %c0_i32 = arith.constant 0 : i32
    %c0_i32_0 = arith.constant 0 : i32
    %c0_i32_1 = arith.constant 0 : i32
    return %arg1, %c0_i32, %c0_i32_0 : i32, i32, i32
  }
  func.func @transform_4(%arg0: i32, %arg1: i32) -> (i32, i32, i32) {
    %c0_i32 = arith.constant 0 : i32
    %c0_i32_0 = arith.constant 0 : i32
    %c0_i32_1 = arith.constant 0 : i32
    return %arg1, %c0_i32, %c0_i32_0 : i32, i32, i32
  }
  func.func @transform_5(%arg0: i32, %arg1: i32) -> (i32, i32, i32) {
    %c0_i32 = arith.constant 0 : i32
    %c0_i32_0 = arith.constant 0 : i32
    %c0_i32_1 = arith.constant 0 : i32
    return %arg1, %c0_i32, %c0_i32_0 : i32, i32, i32
  }
  func.func @transform_6(%arg0: i32, %arg1: i32) -> (i32, i32, i32) {
    %c0_i32 = arith.constant 0 : i32
    %c0_i32_0 = arith.constant 0 : i32
    %c0_i32_1 = arith.constant 0 : i32
    return %arg1, %c0_i32, %c0_i32_0 : i32, i32, i32
  }
  func.func @transform_7(%arg0: i32, %arg1: i32) -> (i32, i32, i32) {
    %c0_i32 = arith.constant 0 : i32
    %c0_i32_0 = arith.constant 0 : i32
    %c0_i32_1 = arith.constant 0 : i32
    return %arg1, %c0_i32, %c0_i32_0 : i32, i32, i32
  }
  func.func @transform_8(%arg0: i32, %arg1: i32) -> (i32, i32) {
    %c0_i32 = arith.constant 0 : i32
    %c0_i32_0 = arith.constant 0 : i32
    %c0_i32_1 = arith.constant 0 : i32
    return %c0_i32, %c0_i32_0 : i32, i32
  }
  func.func @transform_9(%arg0: i32, %arg1: i32) -> (i32, i32) {
    %c0_i32 = arith.constant 0 : i32
    %c0_i32_0 = arith.constant 0 : i32
    %c0_i32_1 = arith.constant 0 : i32
    return %c0_i32, %c0_i32_0 : i32, i32
  }
  func.func @transform_10(%arg0: i32, %arg1: i32) -> (i32, i32) {
    %c0_i32 = arith.constant 0 : i32
    %c0_i32_0 = arith.constant 0 : i32
    return %arg0, %c0_i32 : i32, i32
  }
}

</mosaic_0001>

<bundles_post_ra>
// kernel: trans_model_forward.1
= control target key start
LH: loop header
LB: loop body
LE: loop exit
PB: predicated region body
PF: predicated region fallthrough
CT: control target
= control target key end

     0   :  { %s5797_s0 = inlined_call_operand.vmem [shape: f32[16,32], index: 0, kind: input, shape index: {}]   ;;  %s5798_s1 = inlined_call_operand.vmem [shape: bf16[2,32,96], index: 1, kind: input, shape index: {}]   ;;  %s5799_s2 = inlined_call_operand.vmem [shape: f32[2,1,96], index: 2, kind: input, shape index: {}]   ;;  %s5800_s3 = inlined_call_operand.vmem [shape: bf16[2,32,32], index: 3, kind: input, shape index: {}]   ;;  %s5801_s4 = inlined_call_operand.vmem [shape: bf16[2,32,2048], index: 4, kind: input, shape index: {}]   ;;  %s5802_s5 = inlined_call_operand.vmem [shape: f32[2,1,2048], index: 5, kind: input, shape index: {}]   ;;  %s5803_s6 = inlined_call_operand.vmem [shape: bf16[2,2048,32], index: 6, kind: input, shape index: {}]   ;;  %s5804_s7 = inlined_call_operand.vmem [shape: f32[2,2,32], index: 7, kind: input, shape index: {}]   ;;  %s5805_s8 = inlined_call_operand.vmem [shape: bf16[32,2], index: 8, kind: input, shape index: {}]   ;;  %s5806_s9 = inlined_call_operand.vmem [shape: f32[1,2], index: 9, kind: input, shape index: {}]   ;;  %s5807_s10 = inlined_call_operand.hbm [shape: f32[2,2], index: 10, kind: output, shape index: {}]  }
   0x1   :  { %5808 = sst [smem:[#allocation7_spill]] %s5798_s1 }
   0x2   :  { %5809 = sst [smem:[#allocation8_spill]] %s5800_s3 }
   0x3   :  { %15 = vsyncpa [#allocation4], 0  ;;  %s5211_s13 = smov 0   ;;  %s5213_s14 = smov 0  }
   0x4   :  { %s5215_s15 = smov 0  }
   0x5 LB: > { %s30_s17 = sadd.s32 1, %s5136_s14  ;;  %p4309_p1 = scmp.ge.s32.totalorder %s5140_s15, 1  ;;  %s5140_s15 = sphi %s5215_s15, %s21_s15   ;;  %s5136_s14 = sphi %s5213_s14, %s5818_s14   ;;  %s5132_s13 = sphi %s5211_s13, %s5817_s13  }
   0x6   : > { %p31_p0 = scmp.ge.s32.totalorder %s30_s17, 2  ;;  %p392_p2 = scmp.lt.s32.totalorder %s5140_s15, 3 }
   0x8   : > { %s5820_s17 = smov (%p31_p0, %s30_s17), 0  ;;  %p393_p3 = pnand %p4309_p1, %p392_p2 }
   0x9   : > { %5810 = sst [smem:[#allocation6_spill]] %s5820_s17  ;;  %p462_p4 = scmp.lt.s32.totalorder (!%p393_p3), %s5132_s13, 1 }
   0xa   : > { %396 = sbr.rel (%p393_p3) target bundleno = 3147 (0xc4b), region = 60  ;;  %s5811_s1 = sld [smem:[#allocation7_spill]] (!%p393_p3) }
   0xb   : > { %s5812_s3 = sld [smem:[#allocation8_spill]] (!%p393_p3)  ;;  %p4320_p5 = scmp.ne.s32.totalorder (!%p393_p3), %s5132_s13, 0 }
   0xf   : > { %s5234_s18 = scalar_select %p462_p4, %s5132_s13, 1 }
  0x11   : > { %s4529_s19 = sshll.u32 %s5234_s18, 4  ;;  %s4531_s29 = sshll.u32 %s5234_s18, 8 }
  0x12   : > { %s5244_s25 = scalar_lea.vmem %s5811_s1, %s4529_s19  ;;  %s5249_s28 = scalar_lea.vmem %s5812_s3, %s4529_s19 }
  0x13   : > { %s5255_s12 = scalar_lea.vmem %s5802_s5, %s4529_s19  ;;  %s5260_s20 = scalar_lea.vmem %s5801_s4, %s4531_s29 }
  0x14   : > { %s4532_s21 = sshll.u32 %s5234_s18, 10  ;;  %s4319_s26 = sshll.u32 %s5234_s18, 1 }
  0x15   : > { %s5266_s22 = scalar_lea.vmem %s5803_s6, %s4532_s21  ;;  %s5272_s3 = scalar_lea.vmem %s5804_s7, %s4319_s26 }
  0x16   : > { %497 = sbr.rel (%p4320_p5) target bundleno = 29 (0x1d), region = 64 }
  0x1b   : > { %v498_v0 = vld [vmem:[%s5797_s0] sm:$0xff]  ;;  %vm500_vm0 = vcmask 261120   ;;  %v499_v1 = vld [vmem:[%s5797_s0 + $0x8] sm:$0xff] }
  0x1c   : > { %501 = vst.msk [vmem:[#allocation2] sm:$0xff] %vm500_vm0, %v498_v0  ;;  %502 = vst.msk [vmem:[#allocation2 + $0x8] sm:$0xff] %vm500_vm0, %v499_v1 }
  0x1d PF: > { %vm505_vm1 = vcmask 261120   ;;  %v4913_v16 = vld [vmem:[%s5244_s25 + $0x8] sm:$0xff]   ;;  %v5142_v17 = vmov 0.0   ;;  %vm5143_vm2 = vmmov 0   ;;  %v4914_v18 = vld [vmem:[%s5244_s25] sm:$0xff]   ;;  %s5813_s29 = scalar_lea.vmem %s5799_s2, %s5234_s18  ;;  %s5144_s11 = smov 112  }
  0x1e   : > { %4750 = vmatprep.subr.bf16.mxu0 %v5142_v17  ;;  %4754 = vmatprep.mubr.msk.bf16.mxu0 %vm5143_vm2, %v5142_v17  ;;  %v4321_v30 = vld [vmem:[%s5813_s29] ss:$0 sm:$0xff]  ;;  %s5145_s21 = smov 120   ;;  %s5146_s23 = smov 104   ;;  %vm617_vm3 = vcmask 64512   ;;  %vm1946_vm4 = vcmask 130048  }
  0x1f   : > { %4751 = vmatpush3.bf16.msra.mxu0 %v4913_v16  ;;  %4758 = vmatprep.subr.mxu1 %v5142_v17  ;;  %s5147_s18 = smov 96   ;;  %s5148_s24 = smov 64   ;;  %vm1949_vm5 = vcmask 195584  }
  0x20   : > { %4752 = vmatprep.subr.bf16.mxu0 %v5142_v17  ;;  %4760 = vmatprep.mubr.msk.f32.mxu1 %vm5143_vm2, %v5142_v17  ;;  %s5149_s26 = smov 8   ;;  %s5150_s27 = smov 16  }
  0x21   : > { %s5151_s19 = smov 24   ;;  %p4520_p6 = scmp.ne.s32.totalorder %s5132_s13, 1 }
  0x23   : > { %v503_v2 = vld [vmem:[#allocation2] sm:$0xff]  ;;  %v504_v3 = vld [vmem:[#allocation2 + $0x8] sm:$0xff]  ;;  %4753 = vmatpush3.bf16.msra.mxu0 %v4914_v18 }
  0x24   : > { %v506_v4 = vsel %vm505_vm1, %v503_v2, 0.0  ;;  %v509_v5 = vsel %vm505_vm1, %v504_v3, 0.0  ;;  %4773 = vmatprep.subr.mxu0 %v5142_v17 }
  0x25   : > { %507 = vadd.xlane.f32.xlu0 %v506_v4 }
  0x29   : > { %510 = vadd.xlane.f32.xlu0 %v509_v5 }
  0xae   : > { %v508_v6 = vpop.xlane.xlu0 %507 }
  0xaf   : > { %v513_v7 = vmul.f32 0.03125, %v508_v6 }
  0xb1   : > { %v515_v8 = vsub.f32 %v503_v2, %v513_v7 }
  0xb2   : > { %v511_v9 = vpop.xlane.xlu0 %510 }
  0xb3   : > { %v514_v10 = vmul.f32 0.03125, %v511_v9  ;;  %v517_v11 = vmul.f32 %v515_v8, %v515_v8 }
  0xb5   : > { %v516_v12 = vsub.f32 %v504_v3, %v514_v10  ;;  %v519_v13 = vsel %vm505_vm1, %v517_v11, 0.0 }
  0xb6   : > { %520 = vadd.xlane.f32.xlu1 %v519_v13 }
  0xb7   : > { %v518_v14 = vmul.f32 %v516_v12, %v516_v12 }
  0xb9   : > { %v522_v15 = vsel %vm505_vm1, %v518_v14, 0.0 }
  0xba   : > { %523 = vadd.xlane.f32.xlu1 %v522_v15 }
 0x13f   : > { %v521_v19 = vpop.xlane.xlu1 %520 }
 0x140   : > { %v525_v20 = vmul.f32 0.03125, %v521_v19 }
 0x142   : > { %v527_v21 = vadd.f32 1e-05, %v525_v20 }
 0x143   : > { %v524_v22 = vpop.xlane.xlu1 %523 }
 0x144   : > { %v526_v23 = vmul.f32 0.03125, %v524_v22  ;;  %5045 = vrsqrt.f32 %v527_v21 }
 0x146   : > { %v528_v24 = vadd.f32 1e-05, %v526_v23 }
 0x148   : > { %5047 = vrsqrt.f32 %v528_v24 }
 0x151   : > { %v5046_v25 = vpop.eup %5045 }
 0x152   : > { %v531_v27 = vmul.f32 %v5046_v25, %v515_v8 }
 0x155   : > { %v5048_v26 = vpop.eup %5047 }
 0x156   : > { %v532_v28 = vmul.f32 %v5048_v26, %v516_v12 }
 0x158   : > { %v533_v29 = vpack.c.bf16 %v532_v28, %v531_v27 }
 0x15a   : > { %4755 = vmatmul.mubr.msk.bf16.vlgmr.msra.gmra.mxu0 %vm505_vm1, %v533_v29 }
 0x15b   : > { %4775 = vmatprep.mubr.msk.f32.mxu0 %vm5143_vm2, %v5142_v17 }
 0x21a   : > { %v594_v31 = vpop.f32.mrf.mxu0 }
 0x21b   : > { %v5303_v32 = vadd.f32 %v4321_v30, %v594_v31 }
 0x21c   : > { %v4756_v33 = vpop.f32.mrf.mxu0 }
 0x21d   : > { %607 = vrot.lane.b32.xlu1 %v5303_v32, %s5144_s11  ;;  %603 = vrot.lane.b32.xlu0 %v5303_v32, %s5145_s21 }
 0x21e   : > { %v597_v34 = vpop.f32.mrf.mxu0 }
 0x21f   : > { %v5307_v35 = vadd.f32 %v4321_v30, %v597_v34 }
 0x220   : > { %v4757_v36 = vpop.f32.mrf.mxu0 }
 0x221   : > { %611 = vrot.lane.b32.xlu0 %v5303_v32, %s5146_s23  ;;  %605 = vrot.lane.b32.xlu1 %v5307_v35, %s5145_s21 }
 0x225   : > { %615 = vrot.lane.b32.xlu0 %v5303_v32, %s5147_s18  ;;  %609 = vrot.lane.b32.xlu1 %v5307_v35, %s5144_s11 }
 0x229   : > { %613 = vrot.lane.b32.xlu1 %v5307_v35, %s5146_s23 }
 0x22d   : > { %692 = vrot.lane.b32.xlu1 %v5307_v35, %s5147_s18 }
 0x28f   : > { %v5315_v37 = vpop.permute.xlu1 %607  ;;  %v5317_v38 = vpop.permute.xlu0 %603 }
 0x290   : > { %768 = vrot.lane.b32.xlu0 %v5317_v38, %s5147_s18 }
 0x293   : > { %v5320_v39 = vpop.permute.xlu0 %611  ;;  %v5322_v40 = vpop.permute.xlu1 %605 }
 0x294   : > { %920 = vrot.lane.b32.xlu0 %v5315_v37, %s5147_s18  ;;  %844 = vrot.lane.b32.xlu1 %v5322_v40, %s5147_s18 }
 0x297   : > { %v616_v41 = vpop.permute.xlu0 %615  ;;  %v5326_v42 = vpop.permute.xlu1 %609 }
 0x298   : > { %1072 = vrot.lane.b32.xlu0 %v5320_v39, %s5147_s18  ;;  %4759 = vmatpush3.xpose.msk.msra.mxu1 %vm617_vm3, %v616_v41 }
 0x299   : > { %996 = vrot.lane.b32.xlu1 %v5326_v42, %s5147_s18  ;;  %4763 = vmatprep.subr.mxu1 %v5142_v17 }
 0x29b   : > { %4761 = vmatmul.mubr.msk.f32.vlgmr.msra.gmra.mxu1 %vm617_vm3, %v5303_v32  ;;  %v5334_v43 = vpop.permute.xlu1 %613 }
 0x29c   : > { %4765 = vmatprep.mubr.msk.f32.mxu1 %vm5143_vm2, %v5142_v17 }
 0x29d   : > { %1148 = vrot.lane.b32.xlu1 %v5334_v43, %s5147_s18 }
 0x29f   : > { %v693_v44 = vpop.permute.xlu1 %692 }
 0x2a0   : > { %4764 = vmatpush3.xpose.msk.msra.mxu1 %vm617_vm3, %v693_v44 }
 0x2a1   : > { %4768 = vmatprep.subr.mxu1 %v5142_v17 }
 0x2a3   : > { %4766 = vmatmul.mubr.msk.f32.vlgmr.msra.gmra.mxu1 %vm617_vm3, %v5307_v35 }
 0x2a4   : > { %4770 = vmatprep.mubr.msk.f32.mxu1 %vm5143_vm2, %v5142_v17 }
 0x302   : > { %v769_v45 = vpop.permute.xlu0 %768 }
 0x303   : > { %4769 = vmatpush3.xpose.msk.msra.mxu1 %vm617_vm3, %v769_v45 }
 0x304   : > { %4778 = vmatprep.subr.mxu1 %v5142_v17 }
 0x306   : > { %v921_v46 = vpop.permute.xlu0 %920  ;;  %4771 = vmatmul.mubr.msk.f32.vlgmr.msra.gmra.mxu1 %vm617_vm3, %v5317_v38  ;;  %v845_v47 = vpop.permute.xlu1 %844 }
 0x307   : > { %4774 = vmatpush3.xpose.msk.msra.mxu0 %vm617_vm3, %v845_v47  ;;  %4779 = vmatpush3.xpose.msk.msra.mxu1 %vm617_vm3, %v921_v46 }
 0x308   : > { %4780 = vmatprep.mubr.msk.f32.mxu1 %vm5143_vm2, %v5142_v17  ;;  %4783 = vmatprep.subr.mxu0 %v5142_v17 }
 0x309   : > { %4788 = vmatprep.subr.mxu1 %v5142_v17 }
 0x30a   : > { %v1073_v48 = vpop.permute.xlu0 %1072  ;;  %4776 = vmatmul.mubr.msk.f32.vlgmr.msra.gmra.mxu0 %vm617_vm3, %v5322_v40  ;;  %4781 = vmatmul.mubr.msk.f32.vlgmr.msra.gmra.mxu1 %vm617_vm3, %v5315_v37 }
 0x30b   : > { %v997_v49 = vpop.permute.xlu1 %996  ;;  %4789 = vmatpush3.xpose.msk.msra.mxu1 %vm617_vm3, %v1073_v48  ;;  %4785 = vmatprep.mubr.msk.f32.mxu0 %vm5143_vm2, %v5142_v17 }
 0x30c   : > { %4784 = vmatpush3.xpose.msk.msra.mxu0 %vm617_vm3, %v997_v49  ;;  %4790 = vmatprep.mubr.msk.f32.mxu1 %vm5143_vm2, %v5142_v17 }
 0x30d   : > { %4793 = vmatprep.subr.mxu0 %v5142_v17  ;;  %4798 = vmatprep.subr.mxu1 %v5142_v17 }
 0x30e   : > { %4791 = vmatmul.mubr.msk.f32.vlgmr.msra.gmra.mxu1 %vm617_vm3, %v5320_v39 }
 0x30f   : > { %4786 = vmatmul.mubr.msk.f32.vlgmr.msra.gmra.mxu0 %vm617_vm3, %v5326_v42  ;;  %v1149_v50 = vpop.permute.xlu1 %1148  ;;  %4800 = vmatprep.mubr.msk.f32.mxu1 %vm5143_vm2, %v5142_v17 }
 0x310   : > { %4794 = vmatpush3.xpose.msk.msra.mxu0 %vm617_vm3, %v1149_v50  ;;  %4795 = vmatprep.mubr.msk.f32.mxu0 %vm5143_vm2, %v5142_v17 }
 0x311   : > { %4803 = vmatprep.subr.mxu0 %v5142_v17 }
 0x313   : > { %4796 = vmatmul.mubr.msk.f32.vlgmr.msra.gmra.mxu0 %vm617_vm3, %v5334_v43 }
 0x314   : > { %4805 = vmatprep.mubr.msk.f32.mxu0 %vm5143_vm2, %v5142_v17 }
 0x35b   : > { %v688_v51 = vpop.f32.mrf.mxu1 }
 0x35c   : > { %v1224_v52 = vsel %vm617_vm3, %v688_v51, -inf }
 0x35d   : > { %1225 = vmax.xlane.f32.xlu0 %v1224_v52  ;;  %v4762_v53 = vpop.f32.mrf.mxu1 }
 0x363   : > { %v764_v54 = vpop.f32.mrf.mxu1 }
 0x364   : > { %v1227_v55 = vsel %vm617_vm3, %v764_v54, -inf }
 0x365   : > { %1228 = vmax.xlane.f32.xlu1 %v1227_v55  ;;  %v4767_v56 = vpop.f32.mrf.mxu1 }
 0x3c6   : > { %v840_v57 = vpop.f32.mrf.mxu1 }
 0x3c7   : > { %v1230_v58 = vsel %vm617_vm3, %v840_v57, -inf }
 0x3c8   : > { %1231 = vmax.xlane.f32.xlu0 %v1230_v58  ;;  %v4772_v59 = vpop.f32.mrf.mxu1 }
 0x3ca   : > { %v916_v60 = vpop.f32.mrf.mxu0  ;;  %v992_v61 = vpop.f32.mrf.mxu1 }
 0x3cb   : > { %v1233_v62 = vsel %vm617_vm3, %v916_v60, -inf  ;;  %v1236_v3 = vsel %vm617_vm3, %v992_v61, -inf }
 0x3cc   : > { %v4782_v63 = vpop.f32.mrf.mxu1  ;;  %1234 = vmax.xlane.f32.xlu0 %v1233_v62  ;;  %v4777_v0 = vpop.f32.mrf.mxu0 }
 0x3ce   : > { %v1144_v1 = vpop.f32.mrf.mxu1 }
 0x3cf   : > { %v1068_v2 = vpop.f32.mrf.mxu0  ;;  %v1242_v8 = vsel %vm617_vm3, %v1144_v1, -inf }
 0x3d0   : > { %v4792_v4 = vpop.f32.mrf.mxu1  ;;  %1237 = vmax.xlane.f32.xlu0 %v1236_v3  ;;  %v1239_v5 = vsel %vm617_vm3, %v1068_v2, -inf }
 0x3d1   : > { %1240 = vmax.xlane.f32.xlu1 %v1239_v5  ;;  %v4787_v6 = vpop.f32.mrf.mxu0 }
 0x3d3   : > { %v1220_v7 = vpop.f32.mrf.mxu0 }
 0x3d4   : > { %1243 = vmax.xlane.f32.xlu0 %v1242_v8  ;;  %v1245_v9 = vsel %vm617_vm3, %v1220_v7, -inf }
 0x3d5   : > { %1246 = vmax.xlane.f32.xlu1 %v1245_v9  ;;  %v4797_v10 = vpop.f32.mrf.mxu0 }
 0x3e6   : > { %1388 = vrot.lane.b32.xlu1 %v5307_v35, %s5148_s24  ;;  %v1226_v11 = vpop.xlane.xlu0 %1225 }
 0x3e7   : > { %v1248_v12 = vsub.f32 %v688_v51, %v1226_v11 }
 0x3e9   : > { %v1256_v13 = vmul.f32 1.442695, %v1248_v12 }
 0x3ea   : > { %1464 = vrot.lane.b32.xlu1 %v5317_v38, %s5148_s24  ;;  %1312 = vrot.lane.b32.xlu0 %v5303_v32, %s5148_s24 }
 0x3eb   : > { %5049 = vpow2.f32 %v1256_v13 }
 0x3ee   : > { %1540 = vrot.lane.b32.xlu1 %v5322_v40, %s5148_s24  ;;  %1616 = vrot.lane.b32.xlu0 %v5315_v37, %s5148_s24  ;;  %v1229_v14 = vpop.xlane.xlu1 %1228 }
 0x3ef   : > { %v1249_v15 = vsub.f32 %v764_v54, %v1229_v14 }
 0x3f1   : > { %v1258_v16 = vmul.f32 1.442695, %v1249_v15 }
 0x3f2   : > { %1692 = vrot.lane.b32.xlu1 %v5326_v42, %s5148_s24 }
 0x3f3   : > { %5051 = vpow2.f32 %v1258_v16 }
 0x3f8   : > { %v5401_v18 = vpop.eup %5049 }
 0x3f9   : > { %v1272_v19 = vsel %vm617_vm3, %v5401_v18, 0.0 }
 0x400   : > { %v5405_v20 = vpop.eup %5051 }
 0x401   : > { %v1275_v21 = vsel %vm617_vm3, %v5405_v20, 0.0 }
 0x40d   : > { %1273 = vadd.xlane.f32.xlu0 %v1272_v19 }
 0x416   : > { %1276 = vadd.xlane.f32.xlu1 %v1275_v21 }
 0x451   : > { %v1232_v22 = vpop.xlane.xlu0 %1231 }
 0x452   : > { %v1250_v23 = vsub.f32 %v840_v57, %v1232_v22 }
 0x454   : > { %v1260_v24 = vmul.f32 1.442695, %v1250_v23 }
 0x455   : > { %v1235_v25 = vpop.xlane.xlu0 %1234 }
 0x456   : > { %5053 = vpow2.f32 %v1260_v24  ;;  %v1251_v26 = vsub.f32 %v916_v60, %v1235_v25 }
 0x458   : > { %v1262_v27 = vmul.f32 1.442695, %v1251_v26  ;;  %v4915_v26 = vld [vmem:[%s5249_s28 + $0x8] sm:$0xff]  }
 0x459   : > { %v1238_v28 = vpop.xlane.xlu0 %1237 }
 0x45a   : > { %5055 = vpow2.f32 %v1262_v27  ;;  %v1252_v29 = vsub.f32 %v992_v61, %v1238_v28  ;;  %v1241_v30 = vpop.xlane.xlu1 %1240 }
 0x45b   : > { %v1253_v31 = vsub.f32 %v1068_v2, %v1241_v30 }
 0x45c   : > { %v1264_v32 = vmul.f32 1.442695, %v1252_v29  ;;  %v4916_v29 = vld [vmem:[%s5249_s28] sm:$0xff]  }
 0x45d   : > { %v1266_v33 = vmul.f32 1.442695, %v1253_v31  ;;  %v1244_v34 = vpop.xlane.xlu0 %1243 }
 0x45e   : > { %5057 = vpow2.f32 %v1264_v32  ;;  %v1254_v35 = vsub.f32 %v1144_v1, %v1244_v34  ;;  %v1247_v36 = vpop.xlane.xlu1 %1246 }
 0x45f   : > { %5059 = vpow2.f32 %v1266_v33  ;;  %v1255_v37 = vsub.f32 %v1220_v7, %v1247_v36 }
 0x460   : > { %v1268_v38 = vmul.f32 1.442695, %v1254_v35 }
 0x461   : > { %v1270_v40 = vmul.f32 1.442695, %v1255_v37  ;;  %v1313_v41 = vpop.permute.xlu0 %1312 }
 0x462   : > { %5061 = vpow2.f32 %v1268_v38  ;;  %v1389_v42 = vpop.permute.xlu1 %1388  ;;  %4799 = vmatpush3.msra.mxu1 %v1313_v41 }
 0x463   : > { %v5054_v44 = vpop.eup %5053  ;;  %5063 = vpow2.f32 %v1270_v40  ;;  %4804 = vmatpush3.msra.mxu0 %v1389_v42  ;;  %4808 = vmatprep.subr.mxu1 %v5142_v17 }
 0x464   : > { %v1278_v45 = vsel %vm617_vm3, %v5054_v44, 0.0  ;;  %4813 = vmatprep.subr.mxu0 %v5142_v17 }
 0x465   : > { %1279 = vadd.xlane.f32.xlu0 %v1278_v45  ;;  %v1617_v57 = vpop.permute.xlu0 %1616 }
 0x466   : > { %v1465_v56 = vpop.permute.xlu1 %1464 }
 0x467   : > { %v5056_v46 = vpop.eup %5055 }
 0x468   : > { %v1281_v47 = vsel %vm617_vm3, %v5056_v46, 0.0 }
 0x469   : > { %1282 = vadd.xlane.f32.xlu1 %v1281_v47 }
 0x46a   : > { %v1541_v58 = vpop.permute.xlu1 %1540 }
 0x46b   : > { %v5058_v48 = vpop.eup %5057 }
 0x46c   : > { %v5060_v49 = vpop.eup %5059  ;;  %v1284_v50 = vsel %vm617_vm3, %v5058_v48, 0.0 }
 0x46d   : > { %1285 = vadd.xlane.f32.xlu0 %v1284_v50  ;;  %v1287_v51 = vsel %vm617_vm3, %v5060_v49, 0.0 }
 0x46e   : > { %1288 = vadd.xlane.f32.xlu1 %v1287_v51  ;;  %v1693_v60 = vpop.permute.xlu1 %1692 }
 0x46f   : > { %v5415_v52 = vpop.eup %5061 }
 0x470   : > { %v5417_v53 = vpop.eup %5063  ;;  %v1290_v54 = vsel %vm617_vm3, %v5415_v52, 0.0 }
 0x471   : > { %1291 = vadd.xlane.f32.xlu0 %v1290_v54  ;;  %v1293_v55 = vsel %vm617_vm3, %v5417_v53, 0.0 }
 0x472   : > { %1294 = vadd.xlane.f32.xlu1 %v1293_v55 }
 0x483   : > { %1844 = vrot.lane.b32.xlu1 %v5334_v43, %s5148_s24 }
 0x487   : > { %1768 = vrot.lane.b32.xlu0 %v5320_v39, %s5148_s24 }
 0x496   : > { %v1274_v59 = vpop.xlane.xlu0 %1273 }
 0x497   : > { %5065 = vrcp.f32 %v1274_v59  ;;  %v1958_v59 = vlaneseq }
 0x49f   : > { %v1277_v61 = vpop.xlane.xlu1 %1276 }
 0x4a0   : > { %5067 = vrcp.f32 %v1277_v61 }
 0x4a4   : > { %v5066_v62 = vpop.eup %5065 }
 0x4a5   : > { %v1304_v63 = vmul.f32 %v5066_v62, %v5401_v18  ;;  %v1952_v62 = vld [vmem:[%s5272_s3] sm:$0x3] }
 0x4a7   : > { %4801 = vmatmul.mubr.msk.f32.vlgmr.msra.gmra.mxu1 %vm617_vm3, %v1304_v63 }
 0x4a8   : > { %4809 = vmatpush3.msra.mxu1 %v1465_v56  ;;  %4810 = vmatprep.mubr.msk.f32.mxu1 %vm5143_vm2, %v5142_v17 }
 0x4a9   : > { %4818 = vmatprep.subr.mxu1 %v5142_v17 }
 0x4ad   : > { %v5068_v39 = vpop.eup %5067 }
 0x4ae   : > { %v1305_v43 = vmul.f32 %v5068_v39, %v5405_v20 }
 0x4b0   : > { %4806 = vmatmul.mubr.msk.f32.vlgmr.msra.gmra.mxu0 %vm617_vm3, %v1305_v43 }
 0x4b1   : > { %4814 = vmatpush3.msra.mxu0 %v1541_v58  ;;  %4815 = vmatprep.mubr.msk.f32.mxu0 %vm5143_vm2, %v5142_v17 }
 0x4b2   : > { %4823 = vmatprep.subr.mxu0 %v5142_v17 }
 0x4ee   : > { %v1280_v0 = vpop.xlane.xlu0 %1279 }
 0x4ef   : > { %5069 = vrcp.f32 %v1280_v0 }
 0x4f2   : > { %v1283_v1 = vpop.xlane.xlu1 %1282 }
 0x4f3   : > { %5071 = vrcp.f32 %v1283_v1 }
 0x4f6   : > { %v1286_v2 = vpop.xlane.xlu0 %1285 }
 0x4f7   : > { %5073 = vrcp.f32 %v1286_v2  ;;  %v1289_v3 = vpop.xlane.xlu1 %1288 }
 0x4f8   : > { %5075 = vrcp.f32 %v1289_v3 }
 0x4fa   : > { %v1292_v4 = vpop.xlane.xlu0 %1291 }
 0x4fb   : > { %5077 = vrcp.f32 %v1292_v4  ;;  %v1295_v5 = vpop.xlane.xlu1 %1294 }
 0x4fc   : > { %v5070_v6 = vpop.eup %5069  ;;  %5079 = vrcp.f32 %v1295_v5 }
 0x4fd   : > { %v1306_v7 = vmul.f32 %v5070_v6, %v5054_v44 }
 0x4fe   : > { %v1769_v14 = vpop.permute.xlu0 %1768 }
 0x4ff   : > { %4811 = vmatmul.mubr.msk.f32.vlgmr.msra.gmra.mxu1 %vm617_vm3, %v1306_v7  ;;  %v1845_v16 = vpop.permute.xlu1 %1844 }
 0x500   : > { %v5072_v8 = vpop.eup %5071  ;;  %4819 = vmatpush3.msra.mxu1 %v1617_v57  ;;  %4820 = vmatprep.mubr.msk.f32.mxu1 %vm5143_vm2, %v5142_v17 }
 0x501   : > { %v1307_v9 = vmul.f32 %v5072_v8, %v5056_v46  ;;  %4828 = vmatprep.subr.mxu1 %v5142_v17 }
 0x503   : > { %4816 = vmatmul.mubr.msk.f32.vlgmr.msra.gmra.mxu0 %vm617_vm3, %v1307_v9 }
 0x504   : > { %v5074_v10 = vpop.eup %5073  ;;  %4824 = vmatpush3.msra.mxu0 %v1693_v60  ;;  %4825 = vmatprep.mubr.msk.f32.mxu0 %vm5143_vm2, %v5142_v17  ;;  %v5464_v60 = vshrl.u32 %v1958_v59, 7 }
 0x505   : > { %v5076_v11 = vpop.eup %5075  ;;  %4833 = vmatprep.subr.mxu0 %v5142_v17  ;;  %v1308_v12 = vmul.f32 %v5074_v10, %v5058_v48 }
 0x506   : > { %v1309_v13 = vmul.f32 %v5076_v11, %v5060_v49  ;;  %v5467_v61 = vsub.s32 0, %v5464_v60 }
 0x507   : > { %4821 = vmatmul.mubr.msk.f32.vlgmr.msra.gmra.mxu1 %vm617_vm3, %v1308_v12 }
 0x508   : > { %v5078_v15 = vpop.eup %5077  ;;  %4826 = vmatmul.mubr.msk.f32.vlgmr.msra.gmra.mxu0 %vm617_vm3, %v1309_v13  ;;  %4829 = vmatpush3.msra.mxu1 %v1769_v14  ;;  %v1961_v63 = vrot.slane %v1952_v62, %v5467_v61  ;;  %v2065_v62 = vld [vmem:[%s5260_s20 + $0xa0] sm:$0xff] }
 0x509   : > { %v5080_v18 = vpop.eup %5079  ;;  %4834 = vmatpush3.msra.mxu0 %v1845_v16  ;;  %4830 = vmatprep.mubr.msk.f32.mxu1 %vm5143_vm2, %v5142_v17  ;;  %v1310_v19 = vmul.f32 %v5078_v15, %v5415_v52  ;;  %v2061_v16 = vld [vmem:[%s5260_s20 + $0x80] sm:$0xff] }
 0x50a   : > { %4835 = vmatprep.mubr.msk.f32.mxu0 %vm5143_vm2, %v5142_v17  ;;  %v1311_v20 = vmul.f32 %v5080_v18, %v5417_v53  ;;  %4838 = vmatprep.subr.bf16.mxu1 %v5142_v17  ;;  %v2069_v18 = vld [vmem:[%s5260_s20 + $0xc0] sm:$0xff] }
 0x50b   : > { %4831 = vmatmul.mubr.msk.f32.vlgmr.msra.gmra.mxu1 %vm617_vm3, %v1310_v19  ;;  %v2062_v19 = vld [vmem:[%s5260_s20 + $0x88] sm:$0xff] }
 0x50c   : > { %4836 = vmatmul.mubr.msk.f32.vlgmr.msra.gmra.mxu0 %vm617_vm3, %v1311_v20  ;;  %4842 = vmatprep.mubr.msk.bf16.mxu1 %vm5143_vm2, %v5142_v17  ;;  %v4369_v20 = vcombine.high %v2061_v16, %v2069_v18 }
 0x50d   : > { %4839 = vmatpush3.bf16.msra.mxu1 %v4915_v26  ;;  %v2053_v26 = vld [vmem:[%s5260_s20 + $0x40] sm:$0xff] }
 0x50e   : > { %4840 = vmatprep.subr.bf16.mxu1 %v5142_v17  ;;  %2336 = vmatprep.subr.bf16.mxu0 %v4369_v20 }
 0x511   : > { %4841 = vmatpush3.bf16.msra.mxu1 %v4916_v29  ;;  %v2054_v29 = vld [vmem:[%s5260_s20 + $0x48] sm:$0xff] }
 0x567   : > { %v1384_v21 = vpop.f32.mrf.mxu1 }
 0x569   : > { %v4802_v22 = vpop.f32.mrf.mxu1 }
 0x56a   : > { %v4368_v22 = vcombine.low %v2061_v16, %v2069_v18 }
 0x56c   : > { %2337 = vmatpush1.bf16.msra.mxu0 %v4368_v22  ;;  %v2059_v22 = vld [vmem:[%s5260_s20 + $0x70] sm:$0xff] }
 0x570   : > { %v1460_v23 = vpop.f32.mrf.mxu0 }
 0x572   : > { %v4807_v24 = vpop.f32.mrf.mxu0 }
 0x5bf   : > { %v1536_v25 = vpop.f32.mrf.mxu1 }
 0x5c1   : > { %v4812_v27 = vpop.f32.mrf.mxu1 }
 0x5c2   : > { %v2046_v27 = vld [vmem:[%s5260_s20 + $0x8] sm:$0xff] }
 0x5c3   : > { %v1612_v28 = vpop.f32.mrf.mxu0 }
 0x5c4   : > { %v4898_v30 = vpack.i.bf16 %v1612_v28, %v1536_v25  ;;  %v2045_v25 = vld [vmem:[%s5260_s20] sm:$0xff] }
 0x5c5   : > { %v4817_v31 = vpop.f32.mrf.mxu0  ;;  %v4353_v28 = vcombine.high %v2045_v25, %v2053_v26 }
 0x5c6   : > { %4899 = vrot.lane.b32.xlu0 %v4898_v30, %s5149_s26  ;;  %v4352_v30 = vcombine.low %v2045_v25, %v2053_v26  ;;  %v4354_v31 = vcombine.low %v2046_v27, %v2054_v29 }
 0x5c7   : > { %v1688_v32 = vpop.f32.mrf.mxu1  ;;  %2338 = vmatprep.subr.bf16.mxu0 %v4353_v28 }
 0x5c8   : > { %v1764_v33 = vpop.f32.mrf.mxu0  ;;  %2339 = vmatpush1.bf16.msra.mxu0 %v4352_v30 }
 0x5c9   : > { %v4903_v34 = vpack.i.bf16 %v1764_v33, %v1688_v32  ;;  %v4822_v35 = vpop.f32.mrf.mxu1  ;;  %v4355_v32 = vcombine.high %v2046_v27, %v2054_v29  ;;  %v2063_v33 = vld [vmem:[%s5260_s20 + $0x90] sm:$0xff] }
 0x5ca   : > { %v4827_v36 = vpop.f32.mrf.mxu0  ;;  %v2064_v35 = vld [vmem:[%s5260_s20 + $0x98] sm:$0xff] }
 0x5cb   : > { %4904 = vrot.lane.b32.xlu1 %v4903_v34, %s5150_s27  ;;  %v1840_v37 = vpop.f32.mrf.mxu1  ;;  %v2071_v34 = vld [vmem:[%s5260_s20 + $0xd0] sm:$0xff]  ;;  %v5152_v36 = vmov 0  }
 0x5cc   : > { %v1916_v38 = vpop.f32.mrf.mxu0  ;;  %2356 = vmatprep.mubr.bf16.mxu0 %v5152_v36 }
 0x5cd   : > { %v4908_v40 = vpack.i.bf16 %v1916_v38, %v1840_v37  ;;  %v4832_v41 = vpop.f32.mrf.mxu1  ;;  %v4373_v37 = vcombine.high %v2063_v33, %v2071_v34  ;;  %v2072_v38 = vld [vmem:[%s5260_s20 + $0xd8] sm:$0xff] }
 0x5ce   : > { %v4837_v42 = vpop.f32.mrf.mxu0  ;;  %v4374_v41 = vcombine.low %v2064_v35, %v2072_v38 }
 0x5cf   : > { %4909 = vrot.lane.b32.xlu0 %v4908_v40, %s5151_s19  ;;  %v4372_v40 = vcombine.low %v2063_v33, %v2071_v34  ;;  %v4375_v42 = vcombine.high %v2064_v35, %v2072_v38  ;;  %2422 = vmatprep.subr.bf16.mxu0 %v4373_v37  ;;  %v4919_v33 = vld [vmem:[%s5266_s22 + $0x38] sm:$0xff]   ;;  %v4921_v35 = vld [vmem:[%s5266_s22 + $0x70] sm:$0xff]  }
 0x5d0   : > { %v4920_v34 = vld [vmem:[%s5266_s22 + $0xb8] sm:$0xff]   ;;  %v4922_v37 = vld [vmem:[%s5266_s22 + $0xf0] sm:$0xff]  }
 0x5d1   : > { %v4924_v38 = vld [vmem:[%s5266_s22 + $0xb0] sm:$0xff]  }
 0x638   : > { %v4900_v17 = vpop.permute.xlu0 %4899 }
 0x639   : > { %v4902_v45 = vunpack.i.h.bf16 %v4900_v17  ;;  %v4901_v46 = vunpack.i.l.bf16 %v4900_v17 }
 0x63b   : > { %v1945_v50 = vsel %vm617_vm3, %v1460_v23, %v4902_v45  ;;  %v1944_v51 = vsel %vm617_vm3, %v1384_v21, %v4901_v46  ;;  %v2070_v21 = vld [vmem:[%s5260_s20 + $0xc8] sm:$0xff] }
 0x63c   : > { %v4370_v23 = vcombine.low %v2062_v19, %v2070_v21  ;;  %v4371_v24 = vcombine.high %v2062_v19, %v2070_v21  ;;  %v2051_v21 = vld [vmem:[%s5260_s20 + $0x30] sm:$0xff] }
 0x63d   : > { %v4905_v44 = vpop.permute.xlu1 %4904  ;;  %v4365_v27 = vcombine.high %v2051_v21, %v2059_v22  ;;  %v4364_v29 = vcombine.low %v2051_v21, %v2059_v22 }
 0x63e   : > { %v4907_v47 = vunpack.i.h.bf16 %v4905_v44  ;;  %v4906_v48 = vunpack.i.l.bf16 %v4905_v44  ;;  %2379 = vmatprep.subr.bf16.mxu1 %v4371_v24  ;;  %v2060_v24 = vld [vmem:[%s5260_s20 + $0x78] sm:$0xff] }
 0x640   : > { %v1948_v54 = vsel %vm1946_vm4, %v1945_v50, %v4907_v47  ;;  %v1947_v55 = vsel %vm1946_vm4, %v1944_v51, %v4906_v48  ;;  %v2047_v50 = vld [vmem:[%s5260_s20 + $0x10] sm:$0xff] }
 0x641   : > { %v4910_v49 = vpop.permute.xlu0 %4909 }
 0x642   : > { %v4912_v52 = vunpack.i.h.bf16 %v4910_v49  ;;  %v4911_v53 = vunpack.i.l.bf16 %v4910_v49 }
 0x644   : > { %v1951_v56 = vsel %vm1949_vm5, %v1948_v54, %v4912_v52  ;;  %v1950_v57 = vsel %vm1949_vm5, %v1947_v55, %v4911_v53  ;;  %v2055_v52 = vld [vmem:[%s5260_s20 + $0x50] sm:$0xff]  ;;  %v2048_v53 = vld [vmem:[%s5260_s20 + $0x18] sm:$0xff] }
 0x645   : > { %v1953_v58 = vpack.c.bf16 %v1951_v56, %v1950_v57  ;;  %v2056_v54 = vld [vmem:[%s5260_s20 + $0x58] sm:$0xff] }
 0x646   : > { %v4359_v59 = vcombine.high %v2048_v53, %v2056_v54 }
 0x647   : > { %4843 = vmatmul.mubr.msk.bf16.vlgmr.msra.gmra.mxu1 %vm505_vm1, %v1953_v58  ;;  %v4357_v58 = vcombine.high %v2047_v50, %v2055_v52 }
 0x648   : > { %2380 = vmatpush1.bf16.msra.mxu1 %v4370_v23  ;;  %2399 = vmatprep.mubr.bf16.mxu1 %v5152_v36  ;;  %v2052_v23 = vld [vmem:[%s5260_s20 + $0x38] sm:$0xff] }
 0x649   : > { %2381 = vmatprep.subr.bf16.mxu1 %v4355_v32  ;;  %v4367_v28 = vcombine.high %v2052_v23, %v2060_v24  ;;  %v4366_v30 = vcombine.low %v2052_v23, %v2060_v24  ;;  %v4918_v32 = vld [vmem:[%s5266_s22 + $0xf8] sm:$0xff]  }
 0x64c   : > { %2382 = vmatpush1.bf16.msra.mxu1 %v4354_v31  ;;  %v4917_v31 = vld [vmem:[%s5266_s22 + $0x78] sm:$0xff]  }
 0x64d   : > { %2465 = vmatprep.subr.bf16.mxu1 %v4375_v42  ;;  %v4927_v42 = vld [vmem:[%s5266_s22 + $0x28] sm:$0xff]  }
 0x707   : > { %v2011_v39 = vpop.f32.mrf.mxu1 }
 0x708   : > { %v2012_v43 = vadd.f32 %v2011_v39, %v1961_v63  ;;  %v2066_v39 = vld [vmem:[%s5260_s20 + $0xa8] sm:$0xff] }
 0x709   : > { %v4844_v0 = vpop.f32.mrf.mxu1 }
 0x70a   : > { %v2018_v1 = vsel %vm505_vm1, %v2012_v43, 0.0  ;;  %v4356_v0 = vcombine.low %v2047_v50, %v2055_v52  ;;  %v4935_v50 = vld [vmem:[%s5266_s22 + $0x18] sm:$0xff]   ;;  %v4937_v52 = vld [vmem:[%s5266_s22 + $0x50] sm:$0xff]  }
 0x70b   : > { %2019 = vadd.xlane.f32.xlu1 %v2018_v1  ;;  %v2014_v2 = vpop.f32.mrf.mxu1  ;;  %v4358_v1 = vcombine.low %v2048_v53, %v2056_v54  ;;  %v4938_v53 = vld [vmem:[%s5266_s22 + $0xd0] sm:$0xff]  }
 0x70c   : > { %v2015_v3 = vadd.f32 %v2014_v2, %v1961_v63  ;;  %v2073_v63 = vld [vmem:[%s5260_s20 + $0xe0] sm:$0xff]  ;;  %v4939_v54 = vld [vmem:[%s5266_s22 + $0x10] sm:$0xff]  }
 0x70d   : > { %v4845_v4 = vpop.f32.mrf.mxu1  ;;  %v4377_v2 = vcombine.high %v2065_v62, %v2073_v63 }
 0x70e   : > { %v2021_v5 = vsel %vm505_vm1, %v2015_v3, 0.0  ;;  %v2049_v4 = vld [vmem:[%s5260_s20 + $0x20] sm:$0xff] }
 0x70f   : > { %2022 = vadd.xlane.f32.xlu0 %v2021_v5  ;;  %v2057_v5 = vld [vmem:[%s5260_s20 + $0x60] sm:$0xff] }
 0x710   : > { %v4360_v16 = vcombine.low %v2049_v4, %v2057_v5 }
 0x794   : > { %v2020_v6 = vpop.xlane.xlu1 %2019 }
 0x795   : > { %v2024_v7 = vmul.f32 0.03125, %v2020_v6  ;;  %v2050_v6 = vld [vmem:[%s5260_s20 + $0x28] sm:$0xff] }
 0x797   : > { %v2026_v8 = vsub.f32 %v2012_v43, %v2024_v7  ;;  %v2074_v43 = vld [vmem:[%s5260_s20 + $0xe8] sm:$0xff] }
 0x798   : > { %v2023_v9 = vpop.xlane.xlu0 %2022  ;;  %v2058_v7 = vld [vmem:[%s5260_s20 + $0x68] sm:$0xff] }
 0x799   : > { %v2025_v10 = vmul.f32 0.03125, %v2023_v9  ;;  %v2028_v11 = vmul.f32 %v2026_v8, %v2026_v8  ;;  %v4378_v9 = vcombine.low %v2066_v39, %v2074_v43  ;;  %v4362_v18 = vcombine.low %v2050_v6, %v2058_v7 }
 0x79b   : > { %v2027_v12 = vsub.f32 %v2015_v3, %v2025_v10  ;;  %v2030_v13 = vsel %vm505_vm1, %v2028_v11, 0.0  ;;  %v4379_v3 = vcombine.high %v2066_v39, %v2074_v43  ;;  %v4361_v10 = vcombine.high %v2049_v4, %v2057_v5  ;;  %v4947_v39 = vld [vmem:[%s5266_s22] sm:$0xff]  }
 0x79c   : > { %2031 = vadd.xlane.f32.xlu0 %v2030_v13  ;;  %v4363_v11 = vcombine.high %v2050_v6, %v2058_v7  ;;  %v2075_v13 = vld [vmem:[%s5260_s20 + $0xf0] sm:$0xff]  ;;  %v4948_v43 = vld [vmem:[%s5266_s22 + $0x80] sm:$0xff]   ;;  %v2091_v4 = vsub.s32 2, %v5464_v60 }
 0x79d   : > { %v2029_v14 = vmul.f32 %v2027_v12, %v2027_v12  ;;  %v5573_v5 = vld [vmem:[%s5255_s12] sm:$0xff] }
 0x79f   : > { %v2033_v15 = vsel %vm505_vm1, %v2029_v14, 0.0  ;;  %v2068_v14 = vld [vmem:[%s5260_s20 + $0xb8] sm:$0xff] }
 0x7a0   : > { %2034 = vadd.xlane.f32.xlu0 %v2033_v15  ;;  %v2076_v15 = vld [vmem:[%s5260_s20 + $0xf8] sm:$0xff] }
 0x7a1   : > { %v4383_v20 = vcombine.high %v2068_v14, %v2076_v15  ;;  %v4382_v26 = vcombine.low %v2068_v14, %v2076_v15 }
 0x825   : > { %v2032_v17 = vpop.xlane.xlu0 %2031 }
 0x826   : > { %v2036_v44 = vmul.f32 0.03125, %v2032_v17  ;;  %v4928_v17 = vld [vmem:[%s5266_s22 + $0xa8] sm:$0xff]  }
 0x828   : > { %v2038_v45 = vadd.f32 1e-05, %v2036_v44  ;;  %v4929_v44 = vld [vmem:[%s5266_s22 + $0x60] sm:$0xff]  }
 0x829   : > { %v2035_v46 = vpop.xlane.xlu0 %2034 }
 0x82a   : > { %v2037_v47 = vmul.f32 0.03125, %v2035_v46  ;;  %5081 = vrsqrt.f32 %v2038_v45  ;;  %v4930_v45 = vld [vmem:[%s5266_s22 + $0xe0] sm:$0xff]  }
 0x82b   : > { %v4931_v46 = vld [vmem:[%s5266_s22 + $0x20] sm:$0xff]  }
 0x82c   : > { %v2039_v48 = vadd.f32 1e-05, %v2037_v47  ;;  %v4932_v47 = vld [vmem:[%s5266_s22 + $0xa0] sm:$0xff]  }
 0x82e   : > { %5083 = vrsqrt.f32 %v2039_v48  ;;  %v4933_v48 = vld [vmem:[%s5266_s22 + $0x58] sm:$0xff]  }
 0x837   : > { %v5082_v49 = vpop.eup %5081 }
 0x838   : > { %v2042_v55 = vmul.f32 %v5082_v49, %v2026_v8  ;;  %v4376_v8 = vcombine.low %v2065_v62, %v2073_v63  ;;  %v4934_v49 = vld [vmem:[%s5266_s22 + $0xd8] sm:$0xff]   ;;  %v4945_v62 = vld [vmem:[%s5266_s22 + $0x40] sm:$0xff]  }
 0x839   : > { %v4946_v63 = vld [vmem:[%s5266_s22 + $0xc0] sm:$0xff]  }
 0x83b   : > { %v5084_v51 = vpop.eup %5083 }
 0x83c   : > { %v2043_v56 = vmul.f32 %v5084_v51, %v2027_v12  ;;  %v2067_v12 = vld [vmem:[%s5260_s20 + $0xb0] sm:$0xff]  ;;  %v4936_v51 = vld [vmem:[%s5266_s22 + $0x98] sm:$0xff]  }
 0x83d   : > { %v4381_v19 = vcombine.high %v2067_v12, %v2075_v13  ;;  %v4380_v25 = vcombine.low %v2067_v12, %v2075_v13 }
 0x83e   : > { %v5493_v57 = vpack.c.bf16 %v2043_v56, %v2042_v55  ;;  %v4940_v55 = vld [vmem:[%s5266_s22 + $0x90] sm:$0xff]   ;;  %v4941_v56 = vld [vmem:[%s5266_s22 + $0x48] sm:$0xff]  }
 0x840   : > { %4384 = vmatmul.mubr.msk.bf16.vlgmr.msra.gmra.mxu0 %vm505_vm1, %v5493_v57  ;;  %4385 = vmatmul.mubr.msk.bf16.vlgmr.msra.gmra.mxu1 %vm505_vm1, %v5493_v57 }
 0x841   : > { %2423 = vmatpush1.bf16.msra.mxu0 %v4372_v40  ;;  %2466 = vmatpush1.bf16.msra.mxu1 %v4374_v41  ;;  %v4925_v40 = vld [vmem:[%s5266_s22 + $0x68] sm:$0xff]  }
 0x842   : > { %2424 = vmatprep.subr.bf16.mxu0 %v4357_v58  ;;  %2467 = vmatprep.subr.bf16.mxu1 %v4359_v59  ;;  %v4926_v41 = vld [vmem:[%s5266_s22 + $0xe8] sm:$0xff]  }
 0x843   : > { %2442 = vmatprep.mubr.bf16.mxu0 %v5152_v36  ;;  %2485 = vmatprep.mubr.bf16.mxu1 %v5152_v36  ;;  %v4943_v58 = vld [vmem:[%s5266_s22 + $0x8] sm:$0xff]  }
 0x844   : > { %v4944_v59 = vld [vmem:[%s5266_s22 + $0x88] sm:$0xff]  }
 0x845   : > { %2425 = vmatpush1.bf16.msra.mxu0 %v4356_v0  ;;  %2468 = vmatpush1.bf16.msra.mxu1 %v4358_v1  ;;  %v4949_v0 = vld [vmem:[%s5266_s22 + $0x178] sm:$0xff]  }
 0x846   : > { %2508 = vmatprep.subr.bf16.mxu0 %v4377_v2  ;;  %2551 = vmatprep.subr.bf16.mxu1 %v4379_v3  ;;  %v4950_v1 = vld [vmem:[%s5266_s22 + $0x1f8] sm:$0xff]   ;;  %v5568_v2 = vsub.s32 1, %v5464_v60  ;;  %v2095_v3 = vsub.s32 3, %v5464_v60 }
 0x848   : > { %4386 = vmatmul.mubr.msk.bf16.vlgmr.msra.gmra.mxu0 %vm505_vm1, %v5493_v57  ;;  %4387 = vmatmul.mubr.msk.bf16.vlgmr.msra.gmra.mxu1 %vm505_vm1, %v5493_v57 }
 0x849   : > { %2509 = vmatpush1.bf16.msra.mxu0 %v4376_v8  ;;  %2552 = vmatpush1.bf16.msra.mxu1 %v4378_v9  ;;  %v2088_v8 = vrot.slane %v5573_v5, %v5568_v2  ;;  %v2096_v9 = vrot.slane %v5573_v5, %v2095_v3 }
 0x84a   : > { %2510 = vmatprep.subr.bf16.mxu0 %v4361_v10  ;;  %2553 = vmatprep.subr.bf16.mxu1 %v4363_v11  ;;  %v2084_v10 = vrot.slane %v5573_v5, %v5467_v61  ;;  %v2092_v11 = vrot.slane %v5573_v5, %v2091_v4 }
 0x84b   : > { %2528 = vmatprep.mubr.bf16.mxu0 %v5152_v36  ;;  %2571 = vmatprep.mubr.bf16.mxu1 %v5152_v36 }
 0x84d   : > { %2511 = vmatpush1.bf16.msra.mxu0 %v4360_v16  ;;  %2554 = vmatpush1.bf16.msra.mxu1 %v4362_v18  ;;  %v2103_v16 = vsub.s32 5, %v5464_v60  ;;  %v2111_v18 = vsub.s32 7, %v5464_v60 }
 0x84e   : > { %2594 = vmatprep.subr.bf16.mxu0 %v4381_v19  ;;  %2637 = vmatprep.subr.bf16.mxu1 %v4383_v20 }
 0x850   : > { %4388 = vmatmul.mubr.msk.bf16.vlgmr.msra.gmra.mxu0 %vm505_vm1, %v5493_v57  ;;  %4389 = vmatmul.mubr.msk.bf16.vlgmr.msra.gmra.mxu1 %vm505_vm1, %v5493_v57 }
 0x851   : > { %2595 = vmatpush1.bf16.msra.mxu0 %v4380_v25  ;;  %2638 = vmatpush1.bf16.msra.mxu1 %v4382_v26 }
 0x852   : > { %2596 = vmatprep.subr.bf16.mxu0 %v4365_v27  ;;  %2639 = vmatprep.subr.bf16.mxu1 %v4367_v28 }
 0x853   : > { %2614 = vmatprep.mubr.bf16.mxu0 %v5152_v36  ;;  %2657 = vmatprep.mubr.bf16.mxu1 %v5152_v36  ;;  %v4923_v36 = vld [vmem:[%s5266_s22 + $0x30] sm:$0xff]  }
 0x855   : > { %2597 = vmatpush1.bf16.msra.mxu0 %v4364_v29  ;;  %2640 = vmatpush1.bf16.msra.mxu1 %v4366_v30 }
 0x856   : > { %4571 = vmatprep.subr.bf16.mxu0 %v4917_v31  ;;  %4593 = vmatprep.subr.bf16.mxu1 %v4918_v32 }
 0x858   : > { %4390 = vmatmul.mubr.msk.bf16.vlgmr.msra.gmra.mxu0 %vm505_vm1, %v5493_v57  ;;  %4391 = vmatmul.mubr.msk.bf16.vlgmr.msra.gmra.mxu1 %vm505_vm1, %v5493_v57  ;;  %v4942_v57 = vld [vmem:[%s5266_s22 + $0xc8] sm:$0xff]  }
 0x859   : > { %4572 = vmatpush3.bf16.msra.mxu0 %v4919_v33  ;;  %4594 = vmatpush3.bf16.msra.mxu1 %v4920_v34  ;;  %v2104_v33 = vrot.slane %v5573_v5, %v2103_v16  ;;  %v2112_v34 = vrot.slane %v5573_v5, %v2111_v18 }
 0x85a   : > { %4573 = vmatprep.subr.bf16.mxu0 %v4921_v35  ;;  %4595 = vmatprep.subr.bf16.mxu1 %v4922_v37 }
 0x85d   : > { %4574 = vmatpush3.bf16.msra.mxu0 %v4923_v36  ;;  %4596 = vmatpush3.bf16.msra.mxu1 %v4924_v38 }
 0x85e   : > { %4575 = vmatprep.subr.bf16.mxu0 %v4925_v40  ;;  %4597 = vmatprep.subr.bf16.mxu1 %v4926_v41 }
 0x861   : > { %4576 = vmatpush3.bf16.msra.mxu0 %v4927_v42  ;;  %4598 = vmatpush3.bf16.msra.mxu1 %v4928_v17 }
 0x862   : > { %4577 = vmatprep.subr.bf16.mxu0 %v4929_v44  ;;  %4599 = vmatprep.subr.bf16.mxu1 %v4930_v45 }
 0x865   : > { %4578 = vmatpush3.bf16.msra.mxu0 %v4931_v46  ;;  %4600 = vmatpush3.bf16.msra.mxu1 %v4932_v47  ;;  %v4951_v46 = vld [vmem:[%s5266_s22 + $0x138] sm:$0xff]  }
 0x866   : > { %4579 = vmatprep.subr.bf16.mxu0 %v4933_v48  ;;  %4601 = vmatprep.subr.bf16.mxu1 %v4934_v49  ;;  %v4952_v47 = vld [vmem:[%s5266_s22 + $0x1b8] sm:$0xff]  }
 0x869   : > { %4580 = vmatpush3.bf16.msra.mxu0 %v4935_v50  ;;  %4602 = vmatpush3.bf16.msra.mxu1 %v4936_v51 }
 0x86a   : > { %4581 = vmatprep.subr.bf16.mxu0 %v4937_v52  ;;  %4603 = vmatprep.subr.bf16.mxu1 %v4938_v53  ;;  %v4953_v52 = vld [vmem:[%s5266_s22 + $0x170] sm:$0xff]  }
 0x86b   : > { %v4954_v53 = vld [vmem:[%s5266_s22 + $0x1f0] sm:$0xff]  }
 0x86d   : > { %4582 = vmatpush3.bf16.msra.mxu0 %v4939_v54  ;;  %4604 = vmatpush3.bf16.msra.mxu1 %v4940_v55 }
 0x86e   : > { %4583 = vmatprep.subr.bf16.mxu0 %v4941_v56  ;;  %4605 = vmatprep.subr.bf16.mxu1 %v4942_v57 }
 0x871   : > { %4584 = vmatpush3.bf16.msra.mxu0 %v4943_v58  ;;  %4606 = vmatpush3.bf16.msra.mxu1 %v4944_v59 }
 0x872   : > { %4585 = vmatprep.subr.bf16.mxu0 %v4945_v62  ;;  %4607 = vmatprep.subr.bf16.mxu1 %v4946_v63  ;;  %v4955_v62 = vld [vmem:[%s5266_s22 + $0x130] sm:$0xff]  }
 0x873   : > { %v4956_v63 = vld [vmem:[%s5266_s22 + $0x1b0] sm:$0xff]  }
 0x875   : > { %4586 = vmatpush3.bf16.msra.mxu0 %v4947_v39  ;;  %4608 = vmatpush3.bf16.msra.mxu1 %v4948_v43  ;;  %v4957_v39 = vld [vmem:[%s5266_s22 + $0x168] sm:$0xff]  }
 0x876   : > { %4615 = vmatprep.subr.bf16.mxu0 %v4949_v0  ;;  %4637 = vmatprep.subr.bf16.mxu1 %v4950_v1 }
 0x900   : > { %v2358_v6 = vpop.f32.mrf.mxu0  ;;  %v2401_v7 = vpop.f32.mrf.mxu1 }
 0x901   : > { %v2359_v23 = vadd.f32 %v2358_v6, %v2084_v10  ;;  %v2402_v24 = vadd.f32 %v2401_v7, %v2092_v11  ;;  %v4958_v7 = vld [vmem:[%s5266_s22 + $0x1e8] sm:$0xff]  }
 0x902   : > { %v2360_v12 = vpop.f32.mrf.mxu0  ;;  %v2403_v13 = vpop.f32.mrf.mxu1 }
 0x903   : > { %v2361_v19 = vadd.f32 %v2360_v12, %v2088_v8  ;;  %v2404_v20 = vadd.f32 %v2403_v13, %v2096_v9  ;;  %v2668_v40 = vmax.f32 %v2359_v23, 0.0  ;;  %v2670_v41 = vmax.f32 %v2402_v24, 0.0  ;;  %v4961_v12 = vld [vmem:[%s5266_s22 + $0x160] sm:$0xff]   ;;  %v4967_v24 = vld [vmem:[%s5266_s22 + $0x118] sm:$0xff]  }
 0x904   : > { %v2362_v14 = vpop.f32.mrf.mxu0  ;;  %v2405_v15 = vpop.f32.mrf.mxu1  ;;  %v4962_v13 = vld [vmem:[%s5266_s22 + $0x1e0] sm:$0xff]  }
 0x905   : > { %v2363_v21 = vadd.f32 %v2362_v14, %v2084_v10  ;;  %v2406_v22 = vadd.f32 %v2405_v15, %v2092_v11  ;;  %v2669_v35 = vmax.f32 %v2361_v19, 0.0  ;;  %v2671_v37 = vmax.f32 %v2404_v20, 0.0  ;;  %v4959_v10 = vld [vmem:[%s5266_s22 + $0x128] sm:$0xff]   ;;  %v4963_v15 = vld [vmem:[%s5266_s22 + $0x120] sm:$0xff]  }
 0x906   : > { %v2364_v25 = vpop.f32.mrf.mxu0  ;;  %v2407_v26 = vpop.f32.mrf.mxu1  ;;  %v4960_v11 = vld [vmem:[%s5266_s22 + $0x1a8] sm:$0xff]   ;;  %v4964_v20 = vld [vmem:[%s5266_s22 + $0x1a0] sm:$0xff]  }
 0x907   : > { %v2365_v27 = vadd.f32 %v2364_v25, %v2088_v8  ;;  %v2408_v28 = vadd.f32 %v2407_v26, %v2096_v9  ;;  %v2684_v29 = vmax.f32 %v2363_v21, 0.0  ;;  %v2686_v30 = vmax.f32 %v2406_v22, 0.0  ;;  %v4965_v21 = vld [vmem:[%s5266_s22 + $0x158] sm:$0xff]  }
 0x908   : > { %v5587_v31 = vpop.f32.mrf.mxu0  ;;  %v5589_v32 = vpop.f32.mrf.mxu1  ;;  %v4966_v22 = vld [vmem:[%s5266_s22 + $0x1d8] sm:$0xff]  }
 0x909   : > { %v2685_v36 = vmax.f32 %v2365_v27, 0.0  ;;  %v2687_v38 = vmax.f32 %v2408_v28, 0.0  ;;  %v2700_v48 = vpack.c.bf16 %v2684_v29, %v2668_v40  ;;  %v2702_v49 = vpack.c.bf16 %v2686_v30, %v2670_v41  ;;  %v4968_v26 = vld [vmem:[%s5266_s22 + $0x198] sm:$0xff]   ;;  %v4969_v27 = vld [vmem:[%s5266_s22 + $0x150] sm:$0xff]  }
 0x90a   : > { %v2446_v42 = vpop.f32.mrf.mxu0  ;;  %v2489_v17 = vpop.f32.mrf.mxu1  ;;  %v4970_v28 = vld [vmem:[%s5266_s22 + $0x1d0] sm:$0xff]   ;;  %v2099_v29 = vsub.s32 4, %v5464_v60  ;;  %v2107_v30 = vsub.s32 6, %v5464_v60  ;;  %v5043_v60 = vld [vmem:[%s5266_s22 + $0x300] sm:$0xff]  }
 0x90b   : > { %v2701_v44 = vpack.c.bf16 %v2685_v36, %v2669_v35  ;;  %v2703_v45 = vpack.c.bf16 %v2687_v38, %v2671_v37  ;;  %v2447_v54 = vadd.f32 %v2446_v42, %v2104_v33  ;;  %v2490_v55 = vadd.f32 %v2489_v17, %v2112_v34  ;;  %v4972_v37 = vld [vmem:[%s5266_s22 + $0x190] sm:$0xff]   ;;  %v4973_v36 = vld [vmem:[%s5266_s22 + $0x148] sm:$0xff]  }
 0x90c   : > { %v5599_v50 = vpop.f32.mrf.mxu0  ;;  %v5601_v51 = vpop.f32.mrf.mxu1  ;;  %v4974_v38 = vld [vmem:[%s5266_s22 + $0x1c8] sm:$0xff]   ;;  %v2100_v40 = vrot.slane %v5573_v5, %v2099_v29  ;;  %v2108_v41 = vrot.slane %v5573_v5, %v2107_v30 }
 0x90d   : > { %3776 = vmatprep.mubr.bf16.mxu0 %v2701_v44  ;;  %3817 = vmatprep.mubr.bf16.mxu1 %v2703_v45  ;;  %v2673_v43 = vmax.f32 %v2447_v54, 0.0  ;;  %v2675_v0 = vmax.f32 %v2490_v55, 0.0  ;;  %v5642_v42 = vld [vmem:[%s5255_s12 + $0x8] sm:$0xff] }
 0x90e   : > { %v2450_v56 = vpop.f32.mrf.mxu0  ;;  %v2493_v57 = vpop.f32.mrf.mxu1  ;;  %3777 = vmatmul.mubr.bf16.vlgmr.msra.gmra.mxu0 %v2700_v48  ;;  %3818 = vmatmul.mubr.bf16.vlgmr.msra.gmra.mxu1 %v2702_v49  ;;  %v4975_v44 = vld [vmem:[%s5266_s22 + $0x108] sm:$0xff]   ;;  %v2449_v45 = vadd.f32 %v5599_v50, %v2100_v40  ;;  %v4977_v49 = vld [vmem:[%s5266_s22 + $0x140] sm:$0xff]   ;;  %v2492_v5 = vadd.f32 %v5601_v51, %v2108_v41  ;;  %v2445_v50 = vadd.f32 %v5587_v31, %v2100_v40  ;;  %v4998_v40 = vld [vmem:[%s5266_s22 + $0x2d8] sm:$0xff]  }
 0x90f   : > { %v2451_v58 = vadd.f32 %v2450_v56, %v2104_v33  ;;  %v2494_v59 = vadd.f32 %v2493_v57, %v2112_v34  ;;  %4616 = vmatpush3.bf16.msra.mxu0 %v4951_v46  ;;  %4638 = vmatpush3.bf16.msra.mxu1 %v4952_v47  ;;  %v4971_v34 = vld [vmem:[%s5266_s22 + $0x110] sm:$0xff]   ;;  %v2120_v46 = vrot.slane %v5642_v42, %v5568_v2  ;;  %v4976_v48 = vld [vmem:[%s5266_s22 + $0x188] sm:$0xff]   ;;  %v4979_v57 = vld [vmem:[%s5266_s22 + $0x100] sm:$0xff]  }
 0x910   : > { %4617 = vmatprep.subr.bf16.mxu0 %v4953_v52  ;;  %4639 = vmatprep.subr.bf16.mxu1 %v4954_v53  ;;  %v5613_v14 = vpop.f32.mrf.mxu0  ;;  %v5616_v19 = vpop.f32.mrf.mxu1  ;;  %v2128_v52 = vrot.slane %v5642_v42, %v2095_v3  ;;  %v4978_v53 = vld [vmem:[%s5266_s22 + $0x1c0] sm:$0xff]   ;;  %v2488_v55 = vadd.f32 %v5589_v32, %v2108_v41  ;;  %v2690_v3 = vmax.f32 %v2492_v5, 0.0  ;;  %v2672_v31 = vmax.f32 %v2445_v50, 0.0  ;;  %v5006_v50 = vld [vmem:[%s5266_s22 + $0x2c8] sm:$0xff]  }
 0x911   : > { %v2689_v1 = vmax.f32 %v2451_v58, 0.0  ;;  %v2691_v6 = vmax.f32 %v2494_v59, 0.0  ;;  %v2688_v58 = vmax.f32 %v2449_v45, 0.0  ;;  %v4980_v51 = vld [vmem:[%s5266_s22 + $0x180] sm:$0xff]   ;;  %v5000_v45 = vld [vmem:[%s5266_s22 + $0x298] sm:$0xff]  }
 0x912   : > { %v2532_v23 = vpop.f32.mrf.mxu0  ;;  %v2575_v25 = vpop.f32.mrf.mxu1  ;;  %v2674_v32 = vmax.f32 %v2488_v55, 0.0  ;;  %v2124_v55 = vrot.slane %v5642_v42, %v2091_v4  ;;  %v2144_v4 = vrot.slane %v5642_v42, %v2111_v18 }
 0x913   : > { %v2705_v8 = vpack.c.bf16 %v2689_v1, %v2673_v43  ;;  %v2707_v9 = vpack.c.bf16 %v2691_v6, %v2675_v0  ;;  %4618 = vmatpush3.bf16.msra.mxu0 %v4955_v62  ;;  %4640 = vmatpush3.bf16.msra.mxu1 %v4956_v63  ;;  %v2533_v59 = vadd.f32 %v2532_v23, %v2120_v46  ;;  %v4981_v62 = vld [vmem:[%s5266_s22 + $0x278] sm:$0xff]   ;;  %v4990_v23 = vld [vmem:[%s5266_s22 + $0x2e8] sm:$0xff]  }
 0x914   : > { %4619 = vmatprep.subr.bf16.mxu0 %v4957_v39  ;;  %4641 = vmatprep.subr.bf16.mxu1 %v4958_v7  ;;  %v5627_v33 = vpop.f32.mrf.mxu0  ;;  %v5630_v35 = vpop.f32.mrf.mxu1  ;;  %v2576_v63 = vadd.f32 %v2575_v25, %v2128_v52  ;;  %v4982_v39 = vld [vmem:[%s5266_s22 + $0x2f8] sm:$0xff]   ;;  %v2704_v6 = vpack.c.bf16 %v2688_v58, %v2672_v31  ;;  %v4992_v25 = vld [vmem:[%s5266_s22 + $0x2a8] sm:$0xff]  }
 0x915   : > { %3858 = vmatprep.mubr.bf16.mxu0 %v2705_v8  ;;  %3899 = vmatprep.mubr.bf16.mxu1 %v2707_v9  ;;  %v4983_v1 = vld [vmem:[%s5266_s22 + $0x238] sm:$0xff]   ;;  %v2677_v7 = vmax.f32 %v2533_v59, 0.0  ;;  %v2706_v9 = vpack.c.bf16 %v2690_v3, %v2674_v32  ;;  %v2136_v59 = vrot.slane %v5642_v42, %v2103_v16  ;;  %v2578_v3 = vadd.f32 %v5630_v35, %v2124_v55  ;;  %v5012_v35 = vld [vmem:[%s5266_s22 + $0x280] sm:$0xff]  }
 0x916   : > { %v2536_v17 = vpop.f32.mrf.mxu0  ;;  %v2579_v47 = vpop.f32.mrf.mxu1  ;;  %v4984_v8 = vld [vmem:[%s5266_s22 + $0x2b8] sm:$0xff]   ;;  %v2574_v16 = vadd.f32 %v5616_v19, %v2124_v55  ;;  %v5037_v55 = vld [vmem:[%s5266_s22 + $0x348] sm:$0xff]  }
 0x917   : > { %4620 = vmatpush3.bf16.msra.mxu0 %v4959_v10  ;;  %4642 = vmatpush3.bf16.msra.mxu1 %v4960_v11  ;;  %v2537_v54 = vadd.f32 %v2536_v17, %v2120_v46  ;;  %v2580_v56 = vadd.f32 %v2579_v47, %v2128_v52  ;;  %v2679_v10 = vmax.f32 %v2576_v63, 0.0  ;;  %v4985_v11 = vld [vmem:[%s5266_s22 + $0x270] sm:$0xff]   ;;  %v4999_v17 = vld [vmem:[%s5266_s22 + $0x218] sm:$0xff]   ;;  %v2694_v18 = vmax.f32 %v2578_v3, 0.0 }
 0x918   : > { %4621 = vmatprep.subr.bf16.mxu0 %v4961_v12  ;;  %4643 = vmatprep.subr.bf16.mxu1 %v4962_v13  ;;  %v4986_v13 = vld [vmem:[%s5266_s22 + $0x2f0] sm:$0xff]   ;;  %v2678_v19 = vmax.f32 %v2574_v16, 0.0 }
 0x919   : > { %v2693_v43 = vmax.f32 %v2537_v54, 0.0  ;;  %v2695_v0 = vmax.f32 %v2580_v56, 0.0  ;;  %v5001_v46 = vld [vmem:[%s5266_s22 + $0x250] sm:$0xff]   ;;  %v2116_v54 = vrot.slane %v5642_v42, %v5467_v61  ;;  %v5009_v61 = vld [vmem:[%s5266_s22 + $0x240] sm:$0xff]  }
 0x91a   : > { %v5002_v47 = vld [vmem:[%s5266_s22 + $0x2d0] sm:$0xff]  }
 0x91b   : > { %4622 = vmatpush3.bf16.msra.mxu0 %v4963_v15  ;;  %4644 = vmatpush3.bf16.msra.mxu1 %v4964_v20  ;;  %v2709_v12 = vpack.c.bf16 %v2693_v43, %v2677_v7  ;;  %v2711_v15 = vpack.c.bf16 %v2695_v0, %v2679_v10  ;;  %v4987_v20 = vld [vmem:[%s5266_s22 + $0x230] sm:$0xff]   ;;  %v2535_v58 = vadd.f32 %v5627_v33, %v2116_v54  ;;  %v5010_v33 = vld [vmem:[%s5266_s22 + $0x2c0] sm:$0xff]   ;;  %v5014_v7 = vld [vmem:[%s5266_s22 + $0x3f8] sm:$0xff]  }
 0x91c   : > { %4623 = vmatprep.subr.bf16.mxu0 %v4965_v21  ;;  %4645 = vmatprep.subr.bf16.mxu1 %v4966_v22  ;;  %v4988_v21 = vld [vmem:[%s5266_s22 + $0x2b0] sm:$0xff]   ;;  %v4989_v22 = vld [vmem:[%s5266_s22 + $0x268] sm:$0xff]   ;;  %v2531_v63 = vadd.f32 %v5613_v14, %v2116_v54  ;;  %v5011_v43 = vld [vmem:[%s5266_s22 + $0x200] sm:$0xff]  }
 0x91d   : > { %v5004_v52 = vld [vmem:[%s5266_s22 + $0x290] sm:$0xff]   ;;  %v2692_v32 = vmax.f32 %v2535_v58, 0.0  ;;  %v5015_v10 = vld [vmem:[%s5266_s22 + $0x338] sm:$0xff]   ;;  %v2140_v58 = vrot.slane %v5642_v42, %v2107_v30 }
 0x91e   : > { %v2676_v14 = vmax.f32 %v2531_v63, 0.0  ;;  %v5036_v54 = vld [vmem:[%s5266_s22 + $0x390] sm:$0xff]  }
 0x91f   : > { %4624 = vmatpush3.bf16.msra.mxu0 %v4967_v24  ;;  %4646 = vmatpush3.bf16.msra.mxu1 %v4968_v26  ;;  %v4991_v24 = vld [vmem:[%s5266_s22 + $0x228] sm:$0xff]   ;;  %v4993_v26 = vld [vmem:[%s5266_s22 + $0x260] sm:$0xff]  }
 0x920   : > { %4625 = vmatprep.subr.bf16.mxu0 %v4969_v27  ;;  %4647 = vmatprep.subr.bf16.mxu1 %v4970_v28  ;;  %v4994_v27 = vld [vmem:[%s5266_s22 + $0x2e0] sm:$0xff]   ;;  %v5673_v28 = vpop.f32.mrf.mxu0 }
 0x922   : > { %v2618_v41 = vpop.f32.mrf.mxu0 }
 0x923   : > { %4626 = vmatpush3.bf16.msra.mxu0 %v4971_v34  ;;  %4648 = vmatpush3.bf16.msra.mxu1 %v4972_v37  ;;  %v4995_v34 = vld [vmem:[%s5266_s22 + $0x220] sm:$0xff]   ;;  %v5676_v37 = vpop.f32.mrf.mxu1  ;;  %v2619_v0 = vadd.f32 %v2618_v41, %v2136_v59 }
 0x924   : > { %4627 = vmatprep.subr.bf16.mxu0 %v4973_v36  ;;  %4649 = vmatprep.subr.bf16.mxu1 %v4974_v38  ;;  %v4996_v36 = vld [vmem:[%s5266_s22 + $0x2a0] sm:$0xff]   ;;  %v4997_v38 = vld [vmem:[%s5266_s22 + $0x258] sm:$0xff]  }
 0x925   : > { %v5026_v41 = vld [vmem:[%s5266_s22 + $0x3e0] sm:$0xff]  }
 0x927   : > { %4628 = vmatpush3.bf16.msra.mxu0 %v4975_v44  ;;  %4650 = vmatpush3.bf16.msra.mxu1 %v4976_v48  ;;  %v2661_v44 = vpop.f32.mrf.mxu1  ;;  %v5685_v48 = vpop.f32.mrf.mxu0 }
 0x928   : > { %4629 = vmatprep.subr.bf16.mxu0 %v4977_v49  ;;  %4651 = vmatprep.subr.bf16.mxu1 %v4978_v53  ;;  %v5003_v49 = vld [vmem:[%s5266_s22 + $0x210] sm:$0xff]   ;;  %v5005_v53 = vld [vmem:[%s5266_s22 + $0x248] sm:$0xff]  }
 0x929   : > { %v5688_v5 = vpop.f32.mrf.mxu1  ;;  %v2622_v56 = vpop.f32.mrf.mxu0 }
 0x92a   : > { %v2664_v3 = vadd.f32 %v5688_v5, %v2140_v58 }
 0x92b   : > { %4630 = vmatpush3.bf16.msra.mxu0 %v4979_v57  ;;  %4652 = vmatpush3.bf16.msra.mxu1 %v4980_v51  ;;  %v5007_v57 = vld [vmem:[%s5266_s22 + $0x208] sm:$0xff]   ;;  %v2665_v51 = vpop.f32.mrf.mxu1 }
 0x92c   : > { %4659 = vmatprep.subr.bf16.mxu0 %v4981_v62  ;;  %4681 = vmatprep.subr.bf16.mxu1 %v4982_v39  ;;  %v5008_v62 = vld [vmem:[%s5266_s22 + $0x288] sm:$0xff]   ;;  %v2623_v39 = vadd.f32 %v2622_v56, %v2136_v59  ;;  %v2666_v31 = vadd.f32 %v2665_v51, %v2144_v4  ;;  %v2698_v63 = vmax.f32 %v2664_v3, 0.0 }
 0x92d   : > { %v5038_v56 = vld [vmem:[%s5266_s22 + $0x3c8] sm:$0xff]  }
 0x92e   : > { %3859 = vmatmul.mubr.bf16.vlgmr.msra.gmra.mxu0 %v2704_v6  ;;  %3900 = vmatmul.mubr.bf16.vlgmr.msra.gmra.mxu1 %v2706_v9  ;;  %v2662_v6 = vadd.f32 %v2661_v44, %v2144_v4  ;;  %v2699_v9 = vmax.f32 %v2666_v31, 0.0  ;;  %v5028_v44 = vld [vmem:[%s5266_s22 + $0x3a0] sm:$0xff]   ;;  %v5039_v59 = vld [vmem:[%s5266_s22 + $0x308] sm:$0xff]  }
 0x92f   : > { %4660 = vmatpush3.bf16.msra.mxu0 %v4983_v1  ;;  %3940 = vmatprep.mubr.bf16.mxu0 %v2709_v12  ;;  %v5013_v1 = vld [vmem:[%s5266_s22 + $0x378] sm:$0xff]   ;;  %v2681_v12 = vmax.f32 %v2619_v0, 0.0  ;;  %v5042_v4 = vld [vmem:[%s5266_s22 + $0x3c0] sm:$0xff]  }
 0x930   : > { %4682 = vmatpush3.bf16.msra.mxu1 %v4984_v8  ;;  %3981 = vmatprep.mubr.bf16.mxu1 %v2711_v15  ;;  %v2697_v8 = vmax.f32 %v2623_v39, 0.0  ;;  %v2710_v15 = vpack.c.bf16 %v2694_v18, %v2678_v19 }
 0x931   : > { %4661 = vmatprep.subr.bf16.mxu0 %v4985_v11  ;;  %4683 = vmatprep.subr.bf16.mxu1 %v4986_v13  ;;  %v2708_v11 = vpack.c.bf16 %v2692_v32, %v2676_v14  ;;  %v5016_v13 = vld [vmem:[%s5266_s22 + $0x3b8] sm:$0xff]  }
 0x933   : > { %4662 = vmatpush3.bf16.msra.mxu0 %v4987_v20  ;;  %v2683_v20 = vmax.f32 %v2662_v6, 0.0 }
 0x934   : > { %4684 = vmatpush3.bf16.msra.mxu1 %v4988_v21  ;;  %4663 = vmatprep.subr.bf16.mxu0 %v4989_v22  ;;  %v5017_v21 = vld [vmem:[%s5266_s22 + $0x370] sm:$0xff]   ;;  %v2713_v22 = vpack.c.bf16 %v2697_v8, %v2681_v12 }
 0x935   : > { %4685 = vmatprep.subr.bf16.mxu1 %v4990_v23  ;;  %v5018_v23 = vld [vmem:[%s5266_s22 + $0x3f0] sm:$0xff]  }
 0x937   : > { %4664 = vmatpush3.bf16.msra.mxu0 %v4991_v24  ;;  %v2715_v24 = vpack.c.bf16 %v2699_v9, %v2683_v20 }
 0x938   : > { %4686 = vmatpush3.bf16.msra.mxu1 %v4992_v25  ;;  %4665 = vmatprep.subr.bf16.mxu0 %v4993_v26  ;;  %v5019_v25 = vld [vmem:[%s5266_s22 + $0x330] sm:$0xff]  }
 0x939   : > { %4687 = vmatprep.subr.bf16.mxu1 %v4994_v27  ;;  %v5020_v26 = vld [vmem:[%s5266_s22 + $0x3b0] sm:$0xff]   ;;  %v5021_v27 = vld [vmem:[%s5266_s22 + $0x368] sm:$0xff]  }
 0x93b   : > { %4666 = vmatpush3.bf16.msra.mxu0 %v4995_v34  ;;  %v5022_v34 = vld [vmem:[%s5266_s22 + $0x3e8] sm:$0xff]  }
 0x93c   : > { %4688 = vmatpush3.bf16.msra.mxu1 %v4996_v36  ;;  %4667 = vmatprep.subr.bf16.mxu0 %v4997_v38  ;;  %v5023_v36 = vld [vmem:[%s5266_s22 + $0x328] sm:$0xff]  }
 0x93d   : > { %4689 = vmatprep.subr.bf16.mxu1 %v4998_v40  ;;  %v5024_v38 = vld [vmem:[%s5266_s22 + $0x3a8] sm:$0xff]   ;;  %v5025_v40 = vld [vmem:[%s5266_s22 + $0x360] sm:$0xff]  }
 0x93f   : > { %4668 = vmatpush3.bf16.msra.mxu0 %v4999_v17  ;;  %v5027_v17 = vld [vmem:[%s5266_s22 + $0x320] sm:$0xff]  }
 0x940   : > { %4690 = vmatpush3.bf16.msra.mxu1 %v5000_v45  ;;  %4669 = vmatprep.subr.bf16.mxu0 %v5001_v46  ;;  %v5029_v45 = vld [vmem:[%s5266_s22 + $0x358] sm:$0xff]  }
 0x941   : > { %4691 = vmatprep.subr.bf16.mxu1 %v5002_v47  ;;  %v5030_v46 = vld [vmem:[%s5266_s22 + $0x3d8] sm:$0xff]  }
 0x942   : > { %v5031_v47 = vld [vmem:[%s5266_s22 + $0x318] sm:$0xff]  }
 0x943   : > { %4670 = vmatpush3.bf16.msra.mxu0 %v5003_v49  ;;  %v5032_v49 = vld [vmem:[%s5266_s22 + $0x398] sm:$0xff]  }
 0x944   : > { %4692 = vmatpush3.bf16.msra.mxu1 %v5004_v52  ;;  %4671 = vmatprep.subr.bf16.mxu0 %v5005_v53  ;;  %v5033_v52 = vld [vmem:[%s5266_s22 + $0x350] sm:$0xff]  }
 0x945   : > { %4693 = vmatprep.subr.bf16.mxu1 %v5006_v50  ;;  %v5034_v53 = vld [vmem:[%s5266_s22 + $0x3d0] sm:$0xff]  }
 0x946   : > { %v5035_v50 = vld [vmem:[%s5266_s22 + $0x310] sm:$0xff]  }
 0x947   : > { %4672 = vmatpush3.bf16.msra.mxu0 %v5007_v57  ;;  %v2132_v57 = vrot.slane %v5642_v42, %v2099_v29  ;;  %v2660_v29 = vadd.f32 %v5676_v37, %v2140_v58  ;;  %v5044_v42 = vld [vmem:[%s5266_s22 + $0x380] sm:$0xff]  }
 0x948   : > { %4694 = vmatpush3.bf16.msra.mxu1 %v5008_v62  ;;  %4673 = vmatprep.subr.bf16.mxu0 %v5009_v61  ;;  %v5040_v62 = vld [vmem:[%s5266_s22 + $0x388] sm:$0xff]   ;;  %v5041_v61 = vld [vmem:[%s5266_s22 + $0x340] sm:$0xff]  }
 0x949   : > { %4695 = vmatprep.subr.bf16.mxu1 %v5010_v33  ;;  %v2621_v51 = vadd.f32 %v5685_v48, %v2132_v57  ;;  %v2617_v33 = vadd.f32 %v5673_v28, %v2132_v57  ;;  %v2682_v39 = vmax.f32 %v2660_v29, 0.0 }
 0x94b   : > { %4674 = vmatpush3.bf16.msra.mxu0 %v5011_v43  ;;  %v2696_v30 = vmax.f32 %v2621_v51, 0.0  ;;  %v2680_v48 = vmax.f32 %v2617_v33, 0.0  ;;  %v2714_v5 = vpack.c.bf16 %v2698_v63, %v2682_v39 }
 0x94c   : > { %4696 = vmatpush3.bf16.msra.mxu1 %v5012_v35  ;;  %4703 = vmatprep.subr.bf16.mxu0 %v5013_v1 }
 0x94d   : > { %4725 = vmatprep.subr.bf16.mxu1 %v5014_v7  ;;  %v2712_v16 = vpack.c.bf16 %v2696_v30, %v2680_v48 }
 0x94e   : > { %3941 = vmatmul.mubr.bf16.vlgmr.msra.gmra.mxu0 %v2708_v11 }
 0x94f   : > { %3982 = vmatmul.mubr.bf16.vlgmr.msra.gmra.mxu1 %v2710_v15  ;;  %4704 = vmatpush3.bf16.msra.mxu0 %v5015_v10  ;;  %v5085_v10 = vld [vmem:[%s5272_s3] sm:$0x3] }
 0x950   : > { %4022 = vmatprep.mubr.bf16.mxu0 %v2713_v22  ;;  %4726 = vmatpush3.bf16.msra.mxu1 %v5016_v13  ;;  %v2975_v11 = vrot.slane %v5085_v10, %v5568_v2 }
 0x951   : > { %4063 = vmatprep.mubr.bf16.mxu1 %v2715_v24  ;;  %4705 = vmatprep.subr.bf16.mxu0 %v5017_v21 }
 0x952   : > { %4727 = vmatprep.subr.bf16.mxu1 %v5018_v23 }
 0x953   : > { %4706 = vmatpush3.bf16.msra.mxu0 %v5019_v25 }
 0x954   : > { %4728 = vmatpush3.bf16.msra.mxu1 %v5020_v26  ;;  %4707 = vmatprep.subr.bf16.mxu0 %v5021_v27 }
 0x955   : > { %4729 = vmatprep.subr.bf16.mxu1 %v5022_v34 }
 0x957   : > { %4708 = vmatpush3.bf16.msra.mxu0 %v5023_v36 }
 0x958   : > { %4730 = vmatpush3.bf16.msra.mxu1 %v5024_v38  ;;  %4709 = vmatprep.subr.bf16.mxu0 %v5025_v40 }
 0x959   : > { %4731 = vmatprep.subr.bf16.mxu1 %v5026_v41 }
 0x95b   : > { %4710 = vmatpush3.bf16.msra.mxu0 %v5027_v17 }
 0x95c   : > { %4732 = vmatpush3.bf16.msra.mxu1 %v5028_v44  ;;  %4711 = vmatprep.subr.bf16.mxu0 %v5029_v45 }
 0x95d   : > { %4733 = vmatprep.subr.bf16.mxu1 %v5030_v46 }
 0x95f   : > { %4712 = vmatpush3.bf16.msra.mxu0 %v5031_v47 }
 0x960   : > { %4734 = vmatpush3.bf16.msra.mxu1 %v5032_v49  ;;  %4713 = vmatprep.subr.bf16.mxu0 %v5033_v52 }
 0x961   : > { %4735 = vmatprep.subr.bf16.mxu1 %v5034_v53 }
 0x963   : > { %4714 = vmatpush3.bf16.msra.mxu0 %v5035_v50 }
 0x964   : > { %4736 = vmatpush3.bf16.msra.mxu1 %v5036_v54  ;;  %4715 = vmatprep.subr.bf16.mxu0 %v5037_v55 }
 0x965   : > { %4737 = vmatprep.subr.bf16.mxu1 %v5038_v56 }
 0x967   : > { %4716 = vmatpush3.bf16.msra.mxu0 %v5039_v59 }
 0x968   : > { %4738 = vmatpush3.bf16.msra.mxu1 %v5040_v62  ;;  %4717 = vmatprep.subr.bf16.mxu0 %v5041_v61 }
 0x969   : > { %4739 = vmatprep.subr.bf16.mxu1 %v5042_v4 }
 0x96b   : > { %4718 = vmatpush3.bf16.msra.mxu0 %v5043_v60 }
 0x96c   : > { %4740 = vmatpush3.bf16.msra.mxu1 %v5044_v42 }
 0x96e   : > { %4023 = vmatmul.mubr.bf16.vlgmr.msra.gmra.mxu0 %v2712_v16 }
 0x96f   : > { %4064 = vmatmul.mubr.bf16.vlgmr.msra.gmra.mxu1 %v2714_v5 }
 0x9ce   : > { %v4587_v28 = vpop.f32.mrf.mxu0  ;;  %v4609_v31 = vpop.f32.mrf.mxu1 }
 0x9d0   : > { %v4588_v37 = vpop.f32.mrf.mxu0  ;;  %v4610_v43 = vpop.f32.mrf.mxu1 }
 0x9d1   : > { %v4589_v12 = vadd.f32 %v4588_v37, %v4587_v28  ;;  %v4611_v24 = vadd.f32 %v4610_v43, %v4609_v31 }
 0x9d2   : > { %v4590_v32 = vpop.f32.mrf.mxu0  ;;  %v4612_v0 = vpop.f32.mrf.mxu1 }
 0x9d3   : > { %v3779_v20 = vadd.f32 %v4589_v12, %v2975_v11 }
 0x9d4   : > { %v4591_v35 = vpop.f32.mrf.mxu0  ;;  %v4613_v18 = vpop.f32.mrf.mxu1 }
 0x9d5   : > { %v4592_v21 = vadd.f32 %v4591_v35, %v4590_v32  ;;  %v3820_v26 = vadd.f32 %v4611_v24, %v3779_v20  ;;  %v4614_v38 = vadd.f32 %v4613_v18, %v4612_v0 }
 0x9d7   : > { %v3782_v27 = vadd.f32 %v4592_v21, %v2975_v11 }
 0x9d9   : > { %v3823_v17 = vadd.f32 %v4614_v38, %v3782_v27 }
 0x9ee   : > { %v4631_v1 = vpop.f32.mrf.mxu0  ;;  %v4653_v6 = vpop.f32.mrf.mxu1 }
 0x9f0   : > { %v4632_v7 = vpop.f32.mrf.mxu0  ;;  %v4654_v14 = vpop.f32.mrf.mxu1 }
 0x9f1   : > { %v4633_v25 = vadd.f32 %v4632_v7, %v4631_v1  ;;  %v4655_v44 = vadd.f32 %v4654_v14, %v4653_v6 }
 0x9f2   : > { %v4634_v8 = vpop.f32.mrf.mxu0  ;;  %v4656_v19 = vpop.f32.mrf.mxu1 }
 0x9f3   : > { %v3861_v40 = vadd.f32 %v4633_v25, %v3820_v26 }
 0x9f4   : > { %v4635_v9 = vpop.f32.mrf.mxu0  ;;  %v4657_v15 = vpop.f32.mrf.mxu1 }
 0x9f5   : > { %v4636_v41 = vadd.f32 %v4635_v9, %v4634_v8  ;;  %v3902_v47 = vadd.f32 %v4655_v44, %v3861_v40  ;;  %v4658_v52 = vadd.f32 %v4657_v15, %v4656_v19 }
 0x9f7   : > { %v3864_v49 = vadd.f32 %v4636_v41, %v3823_v17 }
 0x9f9   : > { %v3905_v56 = vadd.f32 %v4658_v52, %v3864_v49 }
 0xa0e   : > { %v4675_v13 = vpop.f32.mrf.mxu0 }
 0xa0f   : > { %v4697_v22 = vpop.f32.mrf.mxu1 }
 0xa10   : > { %v4676_v23 = vpop.f32.mrf.mxu0 }
 0xa11   : > { %v4698_v34 = vpop.f32.mrf.mxu1  ;;  %v4677_v45 = vadd.f32 %v4676_v23, %v4675_v13 }
 0xa12   : > { %v4678_v36 = vpop.f32.mrf.mxu0  ;;  %v4699_v57 = vadd.f32 %v4698_v34, %v4697_v22 }
 0xa13   : > { %v4700_v2 = vpop.f32.mrf.mxu1  ;;  %v3943_v53 = vadd.f32 %v4677_v45, %v3902_v47 }
 0xa14   : > { %v4679_v46 = vpop.f32.mrf.mxu0 }
 0xa15   : > { %v4680_v50 = vadd.f32 %v4679_v46, %v4678_v36  ;;  %v4701_v54 = vpop.f32.mrf.mxu1  ;;  %v3984_v51 = vadd.f32 %v4699_v57, %v3943_v53 }
 0xa16   : > { %v4702_v33 = vadd.f32 %v4701_v54, %v4700_v2 }
 0xa17   : > { %v3946_v62 = vadd.f32 %v4680_v50, %v3905_v56 }
 0xa19   : > { %v3987_v63 = vadd.f32 %v4702_v33, %v3946_v62 }
 0xa2e   : > { %v4719_v55 = vpop.f32.mrf.mxu0 }
 0xa2f   : > { %v4741_v58 = vpop.f32.mrf.mxu1 }
 0xa30   : > { %v4720_v59 = vpop.f32.mrf.mxu0 }
 0xa31   : > { %v4721_v61 = vadd.f32 %v4720_v59, %v4719_v55  ;;  %v4742_v3 = vpop.f32.mrf.mxu1 }
 0xa32   : > { %v4722_v4 = vpop.f32.mrf.mxu0  ;;  %v4743_v60 = vadd.f32 %v4742_v3, %v4741_v58 }
 0xa33   : > { %v4025_v29 = vadd.f32 %v4721_v61, %v3984_v51  ;;  %v4744_v30 = vpop.f32.mrf.mxu1 }
 0xa34   : > { %v4723_v42 = vpop.f32.mrf.mxu0 }
 0xa35   : > { %v4066_v48 = vadd.f32 %v4743_v60, %v4025_v29  ;;  %v4724_v39 = vadd.f32 %v4723_v42, %v4722_v4  ;;  %v4745_v16 = vpop.f32.mrf.mxu1 }
 0xa36   : > { %v4746_v28 = vadd.f32 %v4745_v16, %v4744_v30 }
 0xa37   : > { %4072 = vst.msk [vmem:[#allocation2] sm:$0xff] %vm505_vm1, %v4066_v48  ;;  %v4028_v5 = vadd.f32 %v4724_v39, %v3987_v63  ;;  %4077 = sbr.rel (%p4520_p6) target bundleno = 3132 (0xc3c), region = 68 }
 0xa39   : > { %v4069_v31 = vadd.f32 %v4746_v28, %v4028_v5 }
 0xa3b   : > { %4073 = vst.msk [vmem:[#allocation2 + $0x8] sm:$0xff] %vm505_vm1, %v4069_v31 }
 0xa3c   : > { %vm4079_vm6 = vcmask 254976   ;;  %v5086_v6 = vld [vmem:[%s5805_s8 + $0x8] sm:$0xff]   ;;  %v5153_v7 = vmov 0.0   ;;  %vm5154_vm7 = vmmov 0   ;;  %v5087_v14 = vld [vmem:[%s5805_s8] sm:$0xff]   ;;  %vm4160_vm8 = vcmask 9216  }
 0xa3d   : > { %4846 = vmatprep.subr.bf16.mxu0 %v5153_v7  ;;  %4850 = vmatprep.mubr.msk.bf16.mxu0 %vm5154_vm7, %v5153_v7  ;;  %v4521_v13 = vld [vmem:[%s5806_s9] ss:$0 sm:$0xff] }
 0xa3e   : > { %4847 = vmatpush3.bf16.msra.mxu0 %v5086_v6 }
 0xa3f   : > { %4848 = vmatprep.subr.bf16.mxu0 %v5153_v7 }
 0xa42   : > { %v4078_v37 = vld [vmem:[#allocation2] ss:$8 sm:$0x3]  ;;  %4849 = vmatpush3.bf16.msra.mxu0 %v5087_v14 }
 0xa43   : > { %v4080_v43 = vsel %vm4079_vm6, %v4078_v37, 0.0 }
 0xa44   : > { %4081 = vadd.xlane.f32.xlu0 %v4080_v43 }
 0xacd   : > { %v4082_v32 = vpop.xlane.xlu0 %4081 }
 0xace   : > { %v4083_v0 = vmul.f32 0.03125, %v4082_v32 }
 0xad0   : > { %v4084_v35 = vsub.f32 %v4078_v37, %v4083_v0 }
 0xad2   : > { %v4085_v1 = vmul.f32 %v4084_v35, %v4084_v35 }
 0xad4   : > { %v4086_v18 = vsel %vm4079_vm6, %v4085_v1, 0.0 }
 0xad5   : > { %4087 = vadd.xlane.f32.xlu0 %v4086_v18 }
 0xb5e   : > { %v4088_v8 = vpop.xlane.xlu0 %4087 }
 0xb5f   : > { %v4089_v19 = vmul.f32 0.03125, %v4088_v8 }
 0xb61   : > { %v4090_v9 = vadd.f32 1e-05, %v4089_v19 }
 0xb63   : > { %5088 = vrsqrt.f32 %v4090_v9 }
 0xb70   : > { %v5089_v10 = vpop.eup %5088 }
 0xb71   : > { %v4092_v11 = vmul.f32 %v5089_v10, %v4084_v35 }
 0xb73   : > { %v4093_v12 = vpack.c.bf16 %v4092_v11, %v4092_v11 }
 0xb75   : > { %4851 = vmatmul.mubr.msk.bf16.vlgmr.msra.gmra.mxu0 %vm505_vm1, %v4093_v12 }
 0xc35   : > { %v4154_v15 = vpop.f32.mrf.mxu0 }
 0xc36   : > { %v4155_v20 = vadd.f32 %v4521_v13, %v4154_v15 }
 0xc37   : > { %v4852_v21 = vpop.f32.mrf.mxu0 }
 0xc38   : > { %4161 = vst.msk [vmem:[#allocation3] sm:$0x3] %vm4160_vm8, %v4155_v20 }
 0xc39   : > { %v4157_v22 = vpop.f32.mrf.mxu0 }
 0xc3b   : > { %v4853_v23 = vpop.f32.mrf.mxu0 }
 0xc3c PF: > { %s5814_s30 = sadd.s32 4294967295, %s5140_s15   ;;  %s5155_s17 = smov [#allocation3]  }
 0xc3d   : > { %p5773_p7 = scmp.eq.s32.totalorder %s5814_s30, 1  ;;  %s4171_s1 = sshll.u32 %s5155_s17, 4  ;;  %s4172_s1 = int_to_ptr.vmem [resolvable:$true] %s4171_s1 }
 0xc3e   : > { %s5090_s25 = scalar_lea.vmem %s4172_s1, 32  ;;  %p5097_p11 = scmp.lt.s32.totalorder %s4172_s1, %s4172_s1 }
 0xc3f   : > { %p5091_p8 = scmp.ne.s32.totalorder %s4172_s1, %s5090_s25  ;;  %p5098_p12 = scmp.lt.s32.totalorder %s5090_s25, %s5090_s25 }
 0xc41   : > { %p5092_p9 = pnand %p5091_p8, %p5773_p7  ;;  %p5099_p13 = por %p5098_p12, %p5097_p11 }
 0xc43   : > { %p5093_p10 = pneg %p5092_p9 }
 0xc45   : > { %p5100_p0 = pnand %p5099_p13, %p5093_p10 }
 0xc47   : > { %5103 = shalt.err (!%p5100_p0)
}
 0xc48   : > { %4855 = dma.vmem_to_hbm [thread:$0]  (%p5773_p7), %s4172_s1, 32, %s5807_s10, [#allocation4]  }
 0xc49   : > { %5127 = dma.done.wait (%p5773_p7), [#allocation4], 32  }
 0xc4a   : > { %5129 = vsyncadd (%p5773_p7), [#allocation4], 4294967264 }
 0xc4b PF: > { %s21_s15 = sadd.s32 1, %s5140_s15   ;;  %s5816_s21 = sld [smem:[#allocation6_spill]] }
 0xc4c   : > { %p18_p1 = scmp.ge.s32.totalorder %s21_s15, 4   ;;  %s5817_s13 = smov %s5136_s14 }
 0xc4e   :  { %20 = sbr.rel (!%p18_p1) target bundleno = 5 (0x5), region = 117 }
 0xc51   : > { %s5818_s14 = smov %s5816_s21 }
 0xc53   :  { %4184 = vsyncpa [#allocation4], 1 }
 0xc54   :  { %4186 = vsyncpa [#allocation4 + $0x1], 1 }

</bundles_post_ra>
